<compile_context>
chip_gen: v6e
topology: v6e:2x2x1
jax: 0.10.0
libtpu: 0.0.40
codegen_flags: <defaults>
</compile_context>

<pallas_src>
import jax
import jax.numpy as jnp
from jax import lax
from jax.experimental import pallas as pl
from jax.experimental.pallas import tpu as pltpu

THRESH = 0.3   # module-level `thresh`
DECAY = 0.2    # module-level `decay`


def _make_kernel(H, W, Cin, Cout, thresh, decay, with_mem):
    HW = H * W

    def kernel(*refs):
        if with_mem:
            xpad_ref, w_ref, b_ref, mem_ref, spike_ref, memout_ref = refs
        else:
            xpad_ref, w_ref, b_ref, spike_ref, memout_ref = refs
            mem_ref = None

        # ---- Conv2d(3x3, stride=1, pad=1): 9 shifted MXU matmuls, f32 accumulate
        # in vregs (no scratch).  Static double loop -> fully unrolled.
        acc = None
        for kh in range(3):
            for kw in range(3):
                patch = xpad_ref[0, kh:kh + H, kw:kw + W, :].reshape(HW, Cin)
                tap = jnp.dot(patch, w_ref[kh * 3 + kw],
                              preferred_element_type=jnp.float32)
                acc = tap if acc is None else acc + tap
        acc = acc + b_ref[...]                       # (1, Cout) broadcast add

        if mem_ref is not None:                      # carried membrane state
            acc = acc + mem_ref[0]

        # ---- ActFun_b3 forward + membrane decay (fused epilogue, bulk stores).
        spike = (acc > thresh).astype(jnp.float32)
        spike_ref[0] = spike
        memout_ref[0] = acc * decay * (1.0 - spike)

    return kernel


def scnn_forward(x, weight, bias, mem=None, *, thresh=THRESH, decay=DECAY):
    """x: [N, Cin, H, W]; weight: [Cout, Cin, 3, 3] (torch layout); bias: [Cout];
    mem: optional [N, Cout, H, W].  Returns (spike, mem), both [N, Cout, H, W] f32."""
    N, Cin, H, W = x.shape
    Cout = weight.shape[0]
    assert weight.shape == (Cout, Cin, 3, 3)
    # TODO(synk): only kernel_size=3 / stride=1 (the module defaults; padding is
    # hard-coded to 1 in the PyTorch module) are implemented.

    HW = H * W
    x_nhwc = jnp.transpose(x, (0, 2, 3, 1)).astype(jnp.float32)
    xpad = jnp.pad(x_nhwc, ((0, 0), (1, 1), (1, 1), (0, 0)))
    w9 = jnp.transpose(weight, (2, 3, 1, 0)).reshape(9, Cin, Cout).astype(jnp.float32)
    b2 = bias.reshape(1, Cout).astype(jnp.float32)

    with_mem = mem is not None
    args = [xpad, w9, b2]
    in_specs = [
        pl.BlockSpec((1, H + 2, W + 2, Cin), lambda n: (n, 0, 0, 0)),
        pl.BlockSpec((9, Cin, Cout), lambda n: (0, 0, 0)),
        pl.BlockSpec((1, Cout), lambda n: (0, 0)),
    ]
    if with_mem:
        mem_flat = jnp.transpose(mem, (0, 2, 3, 1)).astype(jnp.float32)
        args.append(mem_flat.reshape(N, HW, Cout))
        in_specs.append(pl.BlockSpec((1, HW, Cout), lambda n: (n, 0, 0)))

    out_spec = pl.BlockSpec((1, HW, Cout), lambda n: (n, 0, 0))
    kernel = _make_kernel(H, W, Cin, Cout, thresh, decay, with_mem)

    spike, mem_out = pl.pallas_call(
        kernel,
        out_shape=(jax.ShapeDtypeStruct((N, HW, Cout), jnp.float32),
                   jax.ShapeDtypeStruct((N, HW, Cout), jnp.float32)),
        grid=(N,),
        in_specs=in_specs,
        out_specs=(out_spec, out_spec),
        compiler_params=pltpu.CompilerParams(dimension_semantics=("parallel",)),
    )(*args)

    # NHWC (flattened) -> NCHW to match the torch module's output layout.
    spike = jnp.transpose(spike.reshape(N, H, W, Cout), (0, 3, 1, 2))
    mem_out = jnp.transpose(mem_out.reshape(N, H, W, Cout), (0, 3, 1, 2))
    return spike, mem_out


def scnn_reference(x, weight, bias, mem=None, *, thresh=THRESH, decay=DECAY):
    """Pure-JAX reference (true conv), also returns the pre-activation for checks."""
    y = lax.conv_general_dilated(
        x.astype(jnp.float32), weight.astype(jnp.float32),
        window_strides=(1, 1), padding=((1, 1), (1, 1)),
        dimension_numbers=("NCHW", "OIHW", "NCHW"))
    y = y + bias.reshape(1, -1, 1, 1)
    pre = y if mem is None else mem + y
    spike = (pre > thresh).astype(jnp.float32)
    mem_out = pre * decay * (1.0 - spike)
    return spike, mem_out, pre


def _check(spike_k, mem_k, spike_r, mem_r, pre_r, thresh, tol=1e-4):
    # Spiking is discontinuous in the conv sum; allow disagreement only where the
    # pre-activation sits within float tolerance of the hard threshold.
    near = jnp.abs(pre_r - thresh) < tol
    ok_spike = jnp.all((spike_k == spike_r) | near)
    ok_mem = jnp.all((jnp.abs(mem_k - mem_r) <= tol * (1.0 + jnp.abs(mem_r))) | near)
    return bool(ok_spike) and bool(ok_mem)


if __name__ == "__main__":
    N, Cin, Cout, H, W = 2, 4, 16, 16, 16

    key = jax.random.PRNGKey(0)
    kx, kw, kb = jax.random.split(key, 3)
    x = jax.random.normal(kx, (N, Cin, H, W), dtype=jnp.float32)
    fan_in = Cin * 3 * 3
    bound = 1.0 / (fan_in ** 0.5)
    weight = jax.random.uniform(kw, (Cout, Cin, 3, 3), jnp.float32, -bound, bound)
    bias = jax.random.uniform(kb, (Cout,), jnp.float32, -bound, bound)

    # Step 1: mem=None (the module's default path; zero-mem input is elided).
    spike1, mem1 = jax.block_until_ready(scnn_forward(x, weight, bias))
    r_spike1, r_mem1, r_pre1 = scnn_reference(x, weight, bias)
    assert spike1.shape == (N, Cout, H, W) and mem1.shape == (N, Cout, H, W)
    assert spike1.dtype == jnp.float32 and mem1.dtype == jnp.float32
    assert _check(spike1, mem1, r_spike1, r_mem1, r_pre1, THRESH), "step-1 mismatch"

    # Step 2: carry the membrane state back in (with-mem kernel variant).
    spike2, mem2 = jax.block_until_ready(scnn_forward(x, weight, bias, mem=mem1))
    r_spike2, r_mem2, r_pre2 = scnn_reference(x, weight, bias, mem=r_mem1)
    assert _check(spike2, mem2, r_spike2, r_mem2, r_pre2, THRESH), "step-2 mismatch"

    print("KERNEL_OK")
</pallas_src>

<mosaic_0001>
module attributes {stable_mosaic.version = 11 : i64} {
  func.func @kernel(%arg0: i32, %arg1: memref<1x18x18x4xf32, #tpu.memory_space<vmem>>, %arg2: memref<9x4x16xf32, #tpu.memory_space<vmem>>, %arg3: memref<1x16xf32, #tpu.memory_space<vmem>>, %arg4: memref<1x256x16xf32, #tpu.memory_space<vmem>>, %arg5: memref<1x256x16xf32, #tpu.memory_space<vmem>>) attributes {dimension_semantics = [#tpu.dimension_semantics<parallel>], iteration_bounds = array<i64: 2>, scalar_prefetch = 0 : i64, scratch_operands = 0 : i64, tpu.core_type = #tpu.core_type<tc>, window_params = [{transform_indices = @transform_0, window_bounds = array<i64: 1, 18, 18, 4>}, {pipeline_mode = #tpu.pipeline_mode<synchronous>, transform_indices = @transform_1, window_bounds = array<i64: 9, 4, 16>}, {pipeline_mode = #tpu.pipeline_mode<synchronous>, transform_indices = @transform_2, window_bounds = array<i64: 1, 16>}, {transform_indices = @transform_3, window_bounds = array<i64: 1, 256, 16>}, {transform_indices = @transform_4, window_bounds = array<i64: 1, 256, 16>}]} {
    %c0 = arith.constant 0 : index
    %c0_0 = arith.constant 0 : index
    %c0_1 = arith.constant 0 : index
    %c0_2 = arith.constant 0 : index
    %0 = vector.load %arg1[%c0, %c0_0, %c0_1, %c0_2] : memref<1x18x18x4xf32, #tpu.memory_space<vmem>>, vector<1x16x16x4xf32>
    %1 = vector.shape_cast %0 : vector<1x16x16x4xf32> to vector<16x16x4xf32>
    %2 = vector.shape_cast %1 : vector<16x16x4xf32> to vector<256x4xf32>
    %c0_3 = arith.constant 0 : index
    %c0_4 = arith.constant 0 : index
    %c0_5 = arith.constant 0 : index
    %3 = vector.load %arg2[%c0_3, %c0_4, %c0_5] : memref<9x4x16xf32, #tpu.memory_space<vmem>>, vector<1x4x16xf32>
    %4 = vector.shape_cast %3 : vector<1x4x16xf32> to vector<4x16xf32>
    %cst = arith.constant dense<0.000000e+00> : vector<256x16xf32>
    %5 = tpu.matmul %2, %4, %cst {dimension_numbers = #tpu.dot_dimension_numbers<[1], [0], [0], [1], [0, 0, 1, 1], [], []>} : vector<256x4xf32>, vector<4x16xf32>, vector<256x16xf32> -> vector<256x16xf32>
    %c0_6 = arith.constant 0 : index
    %c0_7 = arith.constant 0 : index
    %c1 = arith.constant 1 : index
    %c0_8 = arith.constant 0 : index
    %6 = vector.load %arg1[%c0_6, %c0_7, %c1, %c0_8] : memref<1x18x18x4xf32, #tpu.memory_space<vmem>>, vector<1x16x16x4xf32>
    %7 = vector.shape_cast %6 : vector<1x16x16x4xf32> to vector<16x16x4xf32>
    %8 = vector.shape_cast %7 : vector<16x16x4xf32> to vector<256x4xf32>
    %c1_9 = arith.constant 1 : index
    %c0_10 = arith.constant 0 : index
    %c0_11 = arith.constant 0 : index
    %9 = vector.load %arg2[%c1_9, %c0_10, %c0_11] : memref<9x4x16xf32, #tpu.memory_space<vmem>>, vector<1x4x16xf32>
    %10 = vector.shape_cast %9 : vector<1x4x16xf32> to vector<4x16xf32>
    %cst_12 = arith.constant dense<0.000000e+00> : vector<256x16xf32>
    %11 = tpu.matmul %8, %10, %cst_12 {dimension_numbers = #tpu.dot_dimension_numbers<[1], [0], [0], [1], [0, 0, 1, 1], [], []>} : vector<256x4xf32>, vector<4x16xf32>, vector<256x16xf32> -> vector<256x16xf32>
    %12 = arith.addf %5, %11 : vector<256x16xf32>
    %c0_13 = arith.constant 0 : index
    %c0_14 = arith.constant 0 : index
    %c2 = arith.constant 2 : index
    %c0_15 = arith.constant 0 : index
    %13 = vector.load %arg1[%c0_13, %c0_14, %c2, %c0_15] : memref<1x18x18x4xf32, #tpu.memory_space<vmem>>, vector<1x16x16x4xf32>
    %14 = vector.shape_cast %13 : vector<1x16x16x4xf32> to vector<16x16x4xf32>
    %15 = vector.shape_cast %14 : vector<16x16x4xf32> to vector<256x4xf32>
    %c2_16 = arith.constant 2 : index
    %c0_17 = arith.constant 0 : index
    %c0_18 = arith.constant 0 : index
    %16 = vector.load %arg2[%c2_16, %c0_17, %c0_18] : memref<9x4x16xf32, #tpu.memory_space<vmem>>, vector<1x4x16xf32>
    %17 = vector.shape_cast %16 : vector<1x4x16xf32> to vector<4x16xf32>
    %cst_19 = arith.constant dense<0.000000e+00> : vector<256x16xf32>
    %18 = tpu.matmul %15, %17, %cst_19 {dimension_numbers = #tpu.dot_dimension_numbers<[1], [0], [0], [1], [0, 0, 1, 1], [], []>} : vector<256x4xf32>, vector<4x16xf32>, vector<256x16xf32> -> vector<256x16xf32>
    %19 = arith.addf %12, %18 : vector<256x16xf32>
    %c0_20 = arith.constant 0 : index
    %c1_21 = arith.constant 1 : index
    %c0_22 = arith.constant 0 : index
    %c0_23 = arith.constant 0 : index
    %20 = vector.load %arg1[%c0_20, %c1_21, %c0_22, %c0_23] : memref<1x18x18x4xf32, #tpu.memory_space<vmem>>, vector<1x16x16x4xf32>
    %21 = vector.shape_cast %20 : vector<1x16x16x4xf32> to vector<16x16x4xf32>
    %22 = vector.shape_cast %21 : vector<16x16x4xf32> to vector<256x4xf32>
    %c3 = arith.constant 3 : index
    %c0_24 = arith.constant 0 : index
    %c0_25 = arith.constant 0 : index
    %23 = vector.load %arg2[%c3, %c0_24, %c0_25] : memref<9x4x16xf32, #tpu.memory_space<vmem>>, vector<1x4x16xf32>
    %24 = vector.shape_cast %23 : vector<1x4x16xf32> to vector<4x16xf32>
    %cst_26 = arith.constant dense<0.000000e+00> : vector<256x16xf32>
    %25 = tpu.matmul %22, %24, %cst_26 {dimension_numbers = #tpu.dot_dimension_numbers<[1], [0], [0], [1], [0, 0, 1, 1], [], []>} : vector<256x4xf32>, vector<4x16xf32>, vector<256x16xf32> -> vector<256x16xf32>
    %26 = arith.addf %19, %25 : vector<256x16xf32>
    %c0_27 = arith.constant 0 : index
    %c1_28 = arith.constant 1 : index
    %c1_29 = arith.constant 1 : index
    %c0_30 = arith.constant 0 : index
    %27 = vector.load %arg1[%c0_27, %c1_28, %c1_29, %c0_30] : memref<1x18x18x4xf32, #tpu.memory_space<vmem>>, vector<1x16x16x4xf32>
    %28 = vector.shape_cast %27 : vector<1x16x16x4xf32> to vector<16x16x4xf32>
    %29 = vector.shape_cast %28 : vector<16x16x4xf32> to vector<256x4xf32>
    %c4 = arith.constant 4 : index
    %c0_31 = arith.constant 0 : index
    %c0_32 = arith.constant 0 : index
    %30 = vector.load %arg2[%c4, %c0_31, %c0_32] : memref<9x4x16xf32, #tpu.memory_space<vmem>>, vector<1x4x16xf32>
    %31 = vector.shape_cast %30 : vector<1x4x16xf32> to vector<4x16xf32>
    %cst_33 = arith.constant dense<0.000000e+00> : vector<256x16xf32>
    %32 = tpu.matmul %29, %31, %cst_33 {dimension_numbers = #tpu.dot_dimension_numbers<[1], [0], [0], [1], [0, 0, 1, 1], [], []>} : vector<256x4xf32>, vector<4x16xf32>, vector<256x16xf32> -> vector<256x16xf32>
    %33 = arith.addf %26, %32 : vector<256x16xf32>
    %c0_34 = arith.constant 0 : index
    %c1_35 = arith.constant 1 : index
    %c2_36 = arith.constant 2 : index
    %c0_37 = arith.constant 0 : index
    %34 = vector.load %arg1[%c0_34, %c1_35, %c2_36, %c0_37] : memref<1x18x18x4xf32, #tpu.memory_space<vmem>>, vector<1x16x16x4xf32>
    %35 = vector.shape_cast %34 : vector<1x16x16x4xf32> to vector<16x16x4xf32>
    %36 = vector.shape_cast %35 : vector<16x16x4xf32> to vector<256x4xf32>
    %c5 = arith.constant 5 : index
    %c0_38 = arith.constant 0 : index
    %c0_39 = arith.constant 0 : index
    %37 = vector.load %arg2[%c5, %c0_38, %c0_39] : memref<9x4x16xf32, #tpu.memory_space<vmem>>, vector<1x4x16xf32>
    %38 = vector.shape_cast %37 : vector<1x4x16xf32> to vector<4x16xf32>
    %cst_40 = arith.constant dense<0.000000e+00> : vector<256x16xf32>
    %39 = tpu.matmul %36, %38, %cst_40 {dimension_numbers = #tpu.dot_dimension_numbers<[1], [0], [0], [1], [0, 0, 1, 1], [], []>} : vector<256x4xf32>, vector<4x16xf32>, vector<256x16xf32> -> vector<256x16xf32>
    %40 = arith.addf %33, %39 : vector<256x16xf32>
    %c0_41 = arith.constant 0 : index
    %c2_42 = arith.constant 2 : index
    %c0_43 = arith.constant 0 : index
    %c0_44 = arith.constant 0 : index
    %41 = vector.load %arg1[%c0_41, %c2_42, %c0_43, %c0_44] : memref<1x18x18x4xf32, #tpu.memory_space<vmem>>, vector<1x16x16x4xf32>
    %42 = vector.shape_cast %41 : vector<1x16x16x4xf32> to vector<16x16x4xf32>
    %43 = vector.shape_cast %42 : vector<16x16x4xf32> to vector<256x4xf32>
    %c6 = arith.constant 6 : index
    %c0_45 = arith.constant 0 : index
    %c0_46 = arith.constant 0 : index
    %44 = vector.load %arg2[%c6, %c0_45, %c0_46] : memref<9x4x16xf32, #tpu.memory_space<vmem>>, vector<1x4x16xf32>
    %45 = vector.shape_cast %44 : vector<1x4x16xf32> to vector<4x16xf32>
    %cst_47 = arith.constant dense<0.000000e+00> : vector<256x16xf32>
    %46 = tpu.matmul %43, %45, %cst_47 {dimension_numbers = #tpu.dot_dimension_numbers<[1], [0], [0], [1], [0, 0, 1, 1], [], []>} : vector<256x4xf32>, vector<4x16xf32>, vector<256x16xf32> -> vector<256x16xf32>
    %47 = arith.addf %40, %46 : vector<256x16xf32>
    %c0_48 = arith.constant 0 : index
    %c2_49 = arith.constant 2 : index
    %c1_50 = arith.constant 1 : index
    %c0_51 = arith.constant 0 : index
    %48 = vector.load %arg1[%c0_48, %c2_49, %c1_50, %c0_51] : memref<1x18x18x4xf32, #tpu.memory_space<vmem>>, vector<1x16x16x4xf32>
    %49 = vector.shape_cast %48 : vector<1x16x16x4xf32> to vector<16x16x4xf32>
    %50 = vector.shape_cast %49 : vector<16x16x4xf32> to vector<256x4xf32>
    %c7 = arith.constant 7 : index
    %c0_52 = arith.constant 0 : index
    %c0_53 = arith.constant 0 : index
    %51 = vector.load %arg2[%c7, %c0_52, %c0_53] : memref<9x4x16xf32, #tpu.memory_space<vmem>>, vector<1x4x16xf32>
    %52 = vector.shape_cast %51 : vector<1x4x16xf32> to vector<4x16xf32>
    %cst_54 = arith.constant dense<0.000000e+00> : vector<256x16xf32>
    %53 = tpu.matmul %50, %52, %cst_54 {dimension_numbers = #tpu.dot_dimension_numbers<[1], [0], [0], [1], [0, 0, 1, 1], [], []>} : vector<256x4xf32>, vector<4x16xf32>, vector<256x16xf32> -> vector<256x16xf32>
    %54 = arith.addf %47, %53 : vector<256x16xf32>
    %c0_55 = arith.constant 0 : index
    %c2_56 = arith.constant 2 : index
    %c2_57 = arith.constant 2 : index
    %c0_58 = arith.constant 0 : index
    %55 = vector.load %arg1[%c0_55, %c2_56, %c2_57, %c0_58] : memref<1x18x18x4xf32, #tpu.memory_space<vmem>>, vector<1x16x16x4xf32>
    %56 = vector.shape_cast %55 : vector<1x16x16x4xf32> to vector<16x16x4xf32>
    %57 = vector.shape_cast %56 : vector<16x16x4xf32> to vector<256x4xf32>
    %c8 = arith.constant 8 : index
    %c0_59 = arith.constant 0 : index
    %c0_60 = arith.constant 0 : index
    %58 = vector.load %arg2[%c8, %c0_59, %c0_60] : memref<9x4x16xf32, #tpu.memory_space<vmem>>, vector<1x4x16xf32>
    %59 = vector.shape_cast %58 : vector<1x4x16xf32> to vector<4x16xf32>
    %cst_61 = arith.constant dense<0.000000e+00> : vector<256x16xf32>
    %60 = tpu.matmul %57, %59, %cst_61 {dimension_numbers = #tpu.dot_dimension_numbers<[1], [0], [0], [1], [0, 0, 1, 1], [], []>} : vector<256x4xf32>, vector<4x16xf32>, vector<256x16xf32> -> vector<256x16xf32>
    %61 = arith.addf %54, %60 : vector<256x16xf32>
    %c0_62 = arith.constant 0 : index
    %c0_63 = arith.constant 0 : index
    %62 = vector.load %arg3[%c0_62, %c0_63] : memref<1x16xf32, #tpu.memory_space<vmem>>, vector<1x16xf32>
    %63 = vector.broadcast %62 : vector<1x16xf32> to vector<256x16xf32>
    %64 = arith.addf %61, %63 : vector<256x16xf32>
    %cst_64 = arith.constant 3.000000e-01 : f32
    %65 = vector.broadcast %cst_64 : f32 to vector<256x16xf32>
    %66 = arith.cmpf ogt, %64, %65 : vector<256x16xf32>
    %67 = arith.extui %66 : vector<256x16xi1> to vector<256x16xi32>
    %68 = arith.sitofp %67 : vector<256x16xi32> to vector<256x16xf32>
    %c0_65 = arith.constant 0 : index
    %c0_66 = arith.constant 0 : index
    %c0_67 = arith.constant 0 : index
    %69 = vector.load %arg4[%c0_65, %c0_66, %c0_67] : memref<1x256x16xf32, #tpu.memory_space<vmem>>, vector<1x256x16xf32>
    %70 = vector.shape_cast %69 : vector<1x256x16xf32> to vector<256x16xf32>
    %71 = vector.shape_cast %68 : vector<256x16xf32> to vector<1x256x16xf32>
    tpu.vector_store %arg4[%c0_65, %c0_66, %c0_67], %71 {strides = array<i32>} : memref<1x256x16xf32, #tpu.memory_space<vmem>>, vector<1x256x16xf32>,
    %cst_68 = arith.constant 2.000000e-01 : f32
    %72 = vector.broadcast %cst_68 : f32 to vector<256x16xf32>
    %73 = arith.mulf %64, %72 : vector<256x16xf32>
    %cst_69 = arith.constant 1.000000e+00 : f32
    %74 = vector.broadcast %cst_69 : f32 to vector<256x16xf32>
    %75 = arith.subf %74, %68 : vector<256x16xf32>
    %76 = arith.mulf %73, %75 : vector<256x16xf32>
    %c0_70 = arith.constant 0 : index
    %c0_71 = arith.constant 0 : index
    %c0_72 = arith.constant 0 : index
    %77 = vector.load %arg5[%c0_70, %c0_71, %c0_72] : memref<1x256x16xf32, #tpu.memory_space<vmem>>, vector<1x256x16xf32>
    %78 = vector.shape_cast %77 : vector<1x256x16xf32> to vector<256x16xf32>
    %79 = vector.shape_cast %76 : vector<256x16xf32> to vector<1x256x16xf32>
    tpu.vector_store %arg5[%c0_70, %c0_71, %c0_72], %79 {strides = array<i32>} : memref<1x256x16xf32, #tpu.memory_space<vmem>>, vector<1x256x16xf32>,
    return
  }
  func.func @transform_0(%arg0: i32) -> (i32, i32, i32, i32) {
    %c0_i32 = arith.constant 0 : i32
    %c0_i32_0 = arith.constant 0 : i32
    %c0_i32_1 = arith.constant 0 : i32
    %c0_i32_2 = arith.constant 0 : i32
    return %arg0, %c0_i32, %c0_i32_0, %c0_i32_1 : i32, i32, i32, i32
  }
  func.func @transform_1(%arg0: i32) -> (i32, i32, i32) {
    %c0_i32 = arith.constant 0 : i32
    %c0_i32_0 = arith.constant 0 : i32
    %c0_i32_1 = arith.constant 0 : i32
    %c0_i32_2 = arith.constant 0 : i32
    return %c0_i32, %c0_i32_0, %c0_i32_1 : i32, i32, i32
  }
  func.func @transform_2(%arg0: i32) -> (i32, i32) {
    %c0_i32 = arith.constant 0 : i32
    %c0_i32_0 = arith.constant 0 : i32
    %c0_i32_1 = arith.constant 0 : i32
    return %c0_i32, %c0_i32_0 : i32, i32
  }
  func.func @transform_3(%arg0: i32) -> (i32, i32, i32) {
    %c0_i32 = arith.constant 0 : i32
    %c0_i32_0 = arith.constant 0 : i32
    %c0_i32_1 = arith.constant 0 : i32
    return %arg0, %c0_i32, %c0_i32_0 : i32, i32, i32
  }
  func.func @transform_4(%arg0: i32) -> (i32, i32, i32) {
    %c0_i32 = arith.constant 0 : i32
    %c0_i32_0 = arith.constant 0 : i32
    %c0_i32_1 = arith.constant 0 : i32
    return %arg0, %c0_i32, %c0_i32_0 : i32, i32, i32
  }
}

</mosaic_0001>

<bundles_post_ra>
// kernel: tpu_custom_call.1
= control target key start
LH: loop header
LB: loop body
LE: loop exit
PB: predicated region body
PF: predicated region fallthrough
CT: control target
= control target key end

     0   :  { %s5381_s15 = smov 0   ;;  %s7051_s0 = inlined_call_operand.vmem [shape: f32[2,18,18,4], index: 0, kind: input, shape index: {}]   ;;  %s7052_s1 = inlined_call_operand.vmem [shape: f32[9,4,16], index: 1, kind: input, shape index: {}]   ;;  %s7053_s2 = inlined_call_operand.vmem [shape: f32[1,16], index: 2, kind: input, shape index: {}]   ;;  %s7054_s3 = inlined_call_operand.vmem [shape: f32[2,256,16], index: 3, kind: output, shape index: {0}]   ;;  %s7055_s4 = inlined_call_operand.vmem [shape: f32[2,256,16], index: 4, kind: output, shape index: {1}]  }
   0x1 LB: > { %s4044_s16 = sadd.s32 4294967295, %s5353_s15   ;;  %p4048_p0 = scmp.ge.s32.totalorder %s5353_s15, 1  ;;  %s5353_s15 = sphi %s5381_s15, %s15_s15  }
   0x2   : > { %p165_p1 = scmp.lt.s32.totalorder %s5353_s15, 3 }
   0x4   : > { %p166_p2 = pnand %p4048_p0, %p165_p1 }
   0x6   : > { %169 = sbr.rel (%p166_p2) target bundleno = 514 (0x202), region = 32 }
   0xb   : > { %v4054_v0 = vld [vmem:[%s7052_s1 + $0x4] sm:$0xf]  ;;  %vm375_vm0 = vcmask 1043456   ;;  %p196_p3 = scmp.lt.s32.totalorder %s4044_s16, 1  ;;  %v243_v1 = vld [vmem:[%s7052_s1] sm:$0xf] }
   0xc   : > { %5335 = vmatprep.subr.msk.mxu1 %vm375_vm0, %v4054_v0  ;;  %4885 = vmatprep.subr.msk.mxu0 %vm375_vm0, %v4054_v0  ;;  %v4121_v2 = vld [vmem:[%s7052_s1 + $0x8] sm:$0xf]  ;;  %vm278_vm1 = vcmask 31744   ;;  %v5435_v9 = vld [vmem:[%s7052_s1 + $0xc] sm:$0xf]  ;;  %vm3795_vm2 = vcmask 130048  }
   0xd   : > { %5336 = vmatpush3.msk.msra.mxu1 %vm375_vm0, %v4054_v0  ;;  %4886 = vmatpush3.msk.msra.mxu0 %vm375_vm0, %v4054_v0  ;;  %s7269_s16 = smov (!%p196_p3, %s4044_s16), 1  ;;  %v5440_v10 = vld [vmem:[%s7052_s1 + $0x10] sm:$0xf]  ;;  %v5599_v43 = vld [vmem:[%s7052_s1 + $0x14] sm:$0xf] }
   0xe   : > { %4935 = vmatprep.subr.msk.mxu1 %vm375_vm0, %v243_v1  ;;  %4985 = vmatprep.subr.msk.mxu0 %vm375_vm0, %v4121_v2  ;;  %s5337_s23 = smul.u32 432, %s7269_s16  ;;  %v5604_v44 = vld [vmem:[%s7052_s1 + $0x18] sm:$0xf]  ;;  %s4586_s17 = sshll.u32 %s7269_s16, 8 }
   0xf   : > { %s6788_s20 = scalar_lea.vmem %s7054_s3, %s4586_s17 }
  0x10   : > { %s5410_s26 = scalar_lea.vmem %s7051_s0, %s5337_s23  ;;  %s6812_s23 = scalar_lea.vmem %s7055_s4, %s4586_s17 }
  0x11   : > { %v244_v3 = vld [vmem:[%s5410_s26 + $0x1] sm:$0xff]  ;;  %v245_v5 = vld [vmem:[%s5410_s26 + $0x9] sm:$0xff]  ;;  %v5424_v7 = vld [vmem:[%s5410_s26 + $0x19] sm:$0xff] }
  0x12   : > { %v5414_v4 = vld [vmem:[%s5410_s26 + $0xc1] sm:$0xff]  ;;  %4887 = vmatprep.mubr.msk.f32.mxu0 %vm278_vm1, %v244_v3  ;;  %v5421_v6 = vld [vmem:[%s5410_s26 + $0xc9] sm:$0xff]  ;;  %v5427_v8 = vld [vmem:[%s5410_s26 + $0xd9] sm:$0xff] }
  0x13   : > { %4911 = vmatprep.mubr.msk.f32.mxu1 %vm278_vm1, %v5414_v4  ;;  %4888 = vmatmul.mubr.msk.f32.vlgmr.msra.gmra.mxu0 %vm278_vm1, %v245_v5  ;;  %v5445_v11 = vld [vmem:[%s5410_s26 + $0x21] sm:$0xff]  ;;  %v5455_v13 = vld [vmem:[%s5410_s26 + $0x31] sm:$0xff]  ;;  %v5473_v15 = vld [vmem:[%s5410_s26 + $0x39] sm:$0xff] }
  0x14   : > { %4912 = vmatmul.mubr.msk.f32.vlgmr.msra.gmra.mxu1 %vm278_vm1, %v5421_v6  ;;  %4986 = vmatpush3.msk.msra.mxu0 %vm375_vm0, %v4121_v2  ;;  %v5448_v12 = vld [vmem:[%s5410_s26 + $0xe1] sm:$0xff]  ;;  %v5458_v14 = vld [vmem:[%s5410_s26 + $0xf1] sm:$0xff]  ;;  %v5476_v16 = vld [vmem:[%s5410_s26 + $0xf9] sm:$0xff] }
  0x15   : > { %4936 = vmatpush3.msk.msra.mxu1 %vm375_vm0, %v243_v1  ;;  %4890 = vmatprep.mubr.msk.f32.mxu0 %vm278_vm1, %v5424_v7  ;;  %v5479_v17 = vld [vmem:[%s5410_s26 + $0x49] sm:$0xff]  ;;  %v5493_v19 = vld [vmem:[%s5410_s26 + $0x51] sm:$0xff]  ;;  %v5499_v21 = vld [vmem:[%s5410_s26 + $0x61] sm:$0xff] }
  0x16   : > { %4914 = vmatprep.mubr.msk.f32.mxu1 %vm278_vm1, %v5427_v8  ;;  %5035 = vmatprep.subr.msk.mxu1 %vm375_vm0, %v5435_v9  ;;  %v5482_v18 = vld [vmem:[%s5410_s26 + $0x109] sm:$0xff]  ;;  %v5496_v20 = vld [vmem:[%s5410_s26 + $0x111] sm:$0xff]  ;;  %v5502_v22 = vld [vmem:[%s5410_s26 + $0x121] sm:$0xff] }
  0x17   : > { %5085 = vmatprep.subr.msk.mxu0 %vm375_vm0, %v5440_v10  ;;  %4891 = vmatmul.mubr.msk.f32.gmra.mxu0 %vm278_vm1, %v5445_v11  ;;  %v5513_v23 = vld [vmem:[%s5410_s26 + $0x69] sm:$0xff]  ;;  %v5519_v25 = vld [vmem:[%s5410_s26 + $0x79] sm:$0xff]  ;;  %v5533_v27 = vld [vmem:[%s5410_s26 + $0x81] sm:$0xff] }
  0x18   : > { %4915 = vmatmul.mubr.msk.f32.gmra.mxu1 %vm278_vm1, %v5448_v12  ;;  %4893 = vmatprep.mubr.msk.f32.mxu0 %vm278_vm1, %v5455_v13  ;;  %v5516_v24 = vld [vmem:[%s5410_s26 + $0x129] sm:$0xff]  ;;  %v5522_v26 = vld [vmem:[%s5410_s26 + $0x139] sm:$0xff]  ;;  %v5536_v28 = vld [vmem:[%s5410_s26 + $0x141] sm:$0xff] }
  0x19   : > { %4917 = vmatprep.mubr.msk.f32.mxu1 %vm278_vm1, %v5458_v14  ;;  %v5539_v29 = vld [vmem:[%s5410_s26 + $0x91] sm:$0xff]  ;;  %v5553_v31 = vld [vmem:[%s5410_s26 + $0x99] sm:$0xff]  ;;  %v5559_v33 = vld [vmem:[%s5410_s26 + $0xa9] sm:$0xff] }
  0x1a   : > { %v5542_v30 = vld [vmem:[%s5410_s26 + $0x151] sm:$0xff]  ;;  %v5556_v32 = vld [vmem:[%s5410_s26 + $0x159] sm:$0xff]  ;;  %v5562_v34 = vld [vmem:[%s5410_s26 + $0x169] sm:$0xff] }
  0x1b   : > { %4894 = vmatmul.mubr.msk.f32.gmra.mxu0 %vm278_vm1, %v5473_v15  ;;  %v5573_v35 = vld [vmem:[%s5410_s26 + $0xb1] sm:$0xff]  ;;  %v211_v37 = vld [vmem:[%s5410_s26] sm:$0xff]  ;;  %v212_v39 = vld [vmem:[%s5410_s26 + $0x8] sm:$0xff] }
  0x1c   : > { %4918 = vmatmul.mubr.msk.f32.gmra.mxu1 %vm278_vm1, %v5476_v16  ;;  %4896 = vmatprep.mubr.msk.f32.mxu0 %vm278_vm1, %v5479_v17  ;;  %v5576_v36 = vld [vmem:[%s5410_s26 + $0x171] sm:$0xff]  ;;  %v928_v38 = vld [vmem:[%s5410_s26 + $0x2] sm:$0xff]  ;;  %v5592_v42 = vld [vmem:[%s5410_s26 + $0x1a] sm:$0xff] }
  0x1d   : > { %4920 = vmatprep.mubr.msk.f32.mxu1 %vm278_vm1, %v5482_v18  ;;  %7116 = vst [vmem:[#allocation2_spill] sm:$0xff] %v5576_v36  ;;  %v929_v40 = vld [vmem:[%s5410_s26 + $0xa] sm:$0xff]  ;;  %v5589_v41 = vld [vmem:[%s5410_s26 + $0x18] sm:$0xff]  ;;  %7117 = vst [vmem:[#allocation3_spill] sm:$0xff] %v5592_v42 }
  0x1e   : > { %v5611_v45 = vld [vmem:[%s5410_s26 + $0x20] sm:$0xff]  ;;  %v5621_v47 = vld [vmem:[%s5410_s26 + $0x30] sm:$0xff]  ;;  %v5639_v49 = vld [vmem:[%s5410_s26 + $0x38] sm:$0xff] }
  0x1f   : > { %4897 = vmatmul.mubr.msk.f32.gmra.mxu0 %vm278_vm1, %v5493_v19  ;;  %v5614_v46 = vld [vmem:[%s5410_s26 + $0x22] sm:$0xff]  ;;  %v5624_v48 = vld [vmem:[%s5410_s26 + $0x32] sm:$0xff]  ;;  %v5642_v50 = vld [vmem:[%s5410_s26 + $0x3a] sm:$0xff] }
  0x20   : > { %4921 = vmatmul.mubr.msk.f32.gmra.mxu1 %vm278_vm1, %v5496_v20  ;;  %4899 = vmatprep.mubr.msk.f32.mxu0 %vm278_vm1, %v5499_v21  ;;  %7118 = vst [vmem:[#allocation4_spill] sm:$0xff] %v5614_v46  ;;  %7119 = vst [vmem:[#allocation5_spill] sm:$0xff] %v5624_v48  ;;  %v5645_v51 = vld [vmem:[%s5410_s26 + $0x48] sm:$0xff]  ;;  %v5659_v53 = vld [vmem:[%s5410_s26 + $0x50] sm:$0xff] }
  0x21   : > { %4923 = vmatprep.mubr.msk.f32.mxu1 %vm278_vm1, %v5502_v22  ;;  %7120 = vst [vmem:[#allocation6_spill] sm:$0xff] %v5642_v50  ;;  %v5648_v52 = vld [vmem:[%s5410_s26 + $0x4a] sm:$0xff]  ;;  %v5662_v54 = vld [vmem:[%s5410_s26 + $0x52] sm:$0xff]  ;;  %v5665_v55 = vld [vmem:[%s5410_s26 + $0x60] sm:$0xff] }
  0x22   : > { %7121 = vst [vmem:[#allocation7_spill] sm:$0xff] %v5648_v52  ;;  %7122 = vst [vmem:[#allocation8_spill] sm:$0xff] %v5662_v54  ;;  %v5668_v56 = vld [vmem:[%s5410_s26 + $0x62] sm:$0xff]  ;;  %v5682_v58 = vld [vmem:[%s5410_s26 + $0x6a] sm:$0xff] }
  0x23   : > { %4900 = vmatmul.mubr.msk.f32.gmra.mxu0 %vm278_vm1, %v5513_v23  ;;  %7123 = vst [vmem:[#allocation9_spill] sm:$0xff] %v5668_v56  ;;  %v5679_v57 = vld [vmem:[%s5410_s26 + $0x68] sm:$0xff]  ;;  %7124 = vst [vmem:[#allocation10_spill] sm:$0xff] %v5682_v58  ;;  %v5685_v59 = vld [vmem:[%s5410_s26 + $0x78] sm:$0xff] }
  0x24   : > { %4924 = vmatmul.mubr.msk.f32.gmra.mxu1 %vm278_vm1, %v5516_v24  ;;  %4902 = vmatprep.mubr.msk.f32.mxu0 %vm278_vm1, %v5519_v25  ;;  %v5688_v60 = vld [vmem:[%s5410_s26 + $0x7a] sm:$0xff]  ;;  %v5702_v62 = vld [vmem:[%s5410_s26 + $0x82] sm:$0xff]  ;;  %v5705_v63 = vld [vmem:[%s5410_s26 + $0x90] sm:$0xff] }
  0x25   : > { %4926 = vmatprep.mubr.msk.f32.mxu1 %vm278_vm1, %v5522_v26  ;;  %7125 = vst [vmem:[#allocation11_spill] sm:$0xff] %v5688_v60  ;;  %v5699_v61 = vld [vmem:[%s5410_s26 + $0x80] sm:$0xff]  ;;  %7126 = vst [vmem:[#allocation12_spill] sm:$0xff] %v5702_v62  ;;  %v5708_v0 = vld [vmem:[%s5410_s26 + $0x92] sm:$0xff] }
  0x26   : > { %7127 = vst [vmem:[#allocation13_spill] sm:$0xff] %v5708_v0  ;;  %v5719_v1 = vld [vmem:[%s5410_s26 + $0x98] sm:$0xff]  ;;  %v5725_v3 = vld [vmem:[%s5410_s26 + $0xa8] sm:$0xff] }
  0x27   : > { %4903 = vmatmul.mubr.msk.f32.gmra.mxu0 %vm278_vm1, %v5533_v27  ;;  %v5722_v2 = vld [vmem:[%s5410_s26 + $0x9a] sm:$0xff]  ;;  %v5728_v5 = vld [vmem:[%s5410_s26 + $0xaa] sm:$0xff] }
  0x28   : > { %4927 = vmatmul.mubr.msk.f32.gmra.mxu1 %vm278_vm1, %v5536_v28  ;;  %4905 = vmatprep.mubr.msk.f32.mxu0 %vm278_vm1, %v5539_v29  ;;  %7128 = vst [vmem:[#allocation14_spill] sm:$0xff] %v5722_v2  ;;  %7129 = vst [vmem:[#allocation15_spill] sm:$0xff] %v5728_v5 }
  0x29   : > { %4929 = vmatprep.mubr.msk.f32.mxu1 %vm278_vm1, %v5542_v30 }
  0x2b   : > { %4906 = vmatmul.mubr.msk.f32.gmra.mxu0 %vm278_vm1, %v5553_v31 }
  0x2c   : > { %4930 = vmatmul.mubr.msk.f32.gmra.mxu1 %vm278_vm1, %v5556_v32  ;;  %4908 = vmatprep.mubr.msk.f32.mxu0 %vm278_vm1, %v5559_v33 }
  0x2d   : > { %4932 = vmatprep.mubr.msk.f32.mxu1 %vm278_vm1, %v5562_v34 }
  0x2f   : > { %4909 = vmatmul.mubr.msk.f32.gmra.mxu0 %vm278_vm1, %v5573_v35 }
  0x30   : > { %4933 = vmatmul.mubr.msk.f32.gmra.mxu1 %vm278_vm1, %v5576_v36  ;;  %4987 = vmatprep.mubr.msk.f32.mxu0 %vm278_vm1, %v928_v38  ;;  %v5748_v38 = vld [vmem:[%s5410_s26 + $0xc2] sm:$0xff]  ;;  %v5888_v36 = vld [vmem:[%s5410_s26 + $0x16a] sm:$0xff] }
  0x31   : > { %4937 = vmatprep.mubr.msk.f32.mxu1 %vm278_vm1, %v211_v37  ;;  %v5745_v37 = vld [vmem:[%s5410_s26 + $0xc0] sm:$0xff]  ;;  %7131 = vst [vmem:[#allocation17_spill] sm:$0xff] %v5748_v38  ;;  %7145 = vst [vmem:[#allocation31_spill] sm:$0xff] %v5888_v36 }
  0x33   : > { %4988 = vmatmul.mubr.msk.f32.vlgmr.msra.gmra.mxu0 %vm278_vm1, %v929_v40  ;;  %v5762_v40 = vld [vmem:[%s5410_s26 + $0xca] sm:$0xff] }
  0x34   : > { %4938 = vmatmul.mubr.msk.f32.vlgmr.msra.gmra.mxu1 %vm278_vm1, %v212_v39  ;;  %5086 = vmatpush3.msk.msra.mxu0 %vm375_vm0, %v5440_v10  ;;  %v5742_v10 = vld [vmem:[%s5410_s26 + $0xb2] sm:$0xff]  ;;  %v5759_v39 = vld [vmem:[%s5410_s26 + $0xc8] sm:$0xff]  ;;  %7132 = vst [vmem:[#allocation18_spill] sm:$0xff] %v5762_v40 }
  0x35   : > { %5036 = vmatpush3.msk.msra.mxu1 %vm375_vm0, %v5435_v9  ;;  %4940 = vmatprep.mubr.msk.f32.mxu1 %vm278_vm1, %v5589_v41  ;;  %v5739_v9 = vld [vmem:[%s5410_s26 + $0xb0] sm:$0xff]  ;;  %7130 = vst [vmem:[#allocation16_spill] sm:$0xff] %v5742_v10 }
  0x36   : > { %4990 = vmatprep.mubr.msk.f32.mxu0 %vm278_vm1, %v5592_v42  ;;  %5135 = vmatprep.subr.msk.mxu1 %vm375_vm0, %v5599_v43  ;;  %v5885_v42 = vld [vmem:[%s5410_s26 + $0x168] sm:$0xff] }
  0x37   : > { %5185 = vmatprep.subr.msk.mxu0 %vm375_vm0, %v5604_v44  ;;  %4991 = vmatmul.mubr.msk.f32.gmra.mxu0 %vm278_vm1, %v5614_v46  ;;  %v5868_v46 = vld [vmem:[%s5410_s26 + $0x152] sm:$0xff] }
  0x38   : > { %4941 = vmatmul.mubr.msk.f32.gmra.mxu1 %vm278_vm1, %v5611_v45  ;;  %4993 = vmatprep.mubr.msk.f32.mxu0 %vm278_vm1, %v5624_v48  ;;  %v5865_v48 = vld [vmem:[%s5410_s26 + $0x150] sm:$0xff]  ;;  %7143 = vst [vmem:[#allocation29_spill] sm:$0xff] %v5868_v46 }
  0x39   : > { %4943 = vmatprep.mubr.msk.f32.mxu1 %vm278_vm1, %v5621_v47 }
  0x3b   : > { %4994 = vmatmul.mubr.msk.f32.gmra.mxu0 %vm278_vm1, %v5642_v50  ;;  %v5848_v50 = vld [vmem:[%s5410_s26 + $0x13a] sm:$0xff] }
  0x3c   : > { %4944 = vmatmul.mubr.msk.f32.gmra.mxu1 %vm278_vm1, %v5639_v49  ;;  %4996 = vmatprep.mubr.msk.f32.mxu0 %vm278_vm1, %v5648_v52  ;;  %v5845_v52 = vld [vmem:[%s5410_s26 + $0x138] sm:$0xff]  ;;  %7141 = vst [vmem:[#allocation27_spill] sm:$0xff] %v5848_v50 }
  0x3d   : > { %4946 = vmatprep.mubr.msk.f32.mxu1 %vm278_vm1, %v5645_v51 }
  0x3f   : > { %4997 = vmatmul.mubr.msk.f32.gmra.mxu0 %vm278_vm1, %v5662_v54  ;;  %v5828_v54 = vld [vmem:[%s5410_s26 + $0x122] sm:$0xff] }
  0x40   : > { %4947 = vmatmul.mubr.msk.f32.gmra.mxu1 %vm278_vm1, %v5659_v53  ;;  %4999 = vmatprep.mubr.msk.f32.mxu0 %vm278_vm1, %v5668_v56  ;;  %v5825_v56 = vld [vmem:[%s5410_s26 + $0x120] sm:$0xff]  ;;  %7139 = vst [vmem:[#allocation25_spill] sm:$0xff] %v5828_v54 }
  0x41   : > { %4949 = vmatprep.mubr.msk.f32.mxu1 %vm278_vm1, %v5665_v55 }
  0x43   : > { %5000 = vmatmul.mubr.msk.f32.gmra.mxu0 %vm278_vm1, %v5682_v58  ;;  %v5808_v58 = vld [vmem:[%s5410_s26 + $0x10a] sm:$0xff] }
  0x44   : > { %4950 = vmatmul.mubr.msk.f32.gmra.mxu1 %vm278_vm1, %v5679_v57  ;;  %5002 = vmatprep.mubr.msk.f32.mxu0 %vm278_vm1, %v5688_v60  ;;  %v5805_v60 = vld [vmem:[%s5410_s26 + $0x108] sm:$0xff]  ;;  %7137 = vst [vmem:[#allocation23_spill] sm:$0xff] %v5808_v58 }
  0x45   : > { %4952 = vmatprep.mubr.msk.f32.mxu1 %vm278_vm1, %v5685_v59 }
  0x47   : > { %5003 = vmatmul.mubr.msk.f32.gmra.mxu0 %vm278_vm1, %v5702_v62  ;;  %v5788_v62 = vld [vmem:[%s5410_s26 + $0xf2] sm:$0xff] }
  0x48   : > { %4953 = vmatmul.mubr.msk.f32.gmra.mxu1 %vm278_vm1, %v5699_v61  ;;  %5005 = vmatprep.mubr.msk.f32.mxu0 %vm278_vm1, %v5708_v0  ;;  %v5785_v0 = vld [vmem:[%s5410_s26 + $0xf0] sm:$0xff]  ;;  %7135 = vst [vmem:[#allocation21_spill] sm:$0xff] %v5788_v62 }
  0x49   : > { %4955 = vmatprep.mubr.msk.f32.mxu1 %vm278_vm1, %v5705_v63 }
  0x4b   : > { %5006 = vmatmul.mubr.msk.f32.gmra.mxu0 %vm278_vm1, %v5722_v2  ;;  %v5768_v2 = vld [vmem:[%s5410_s26 + $0xda] sm:$0xff] }
  0x4c   : > { %4956 = vmatmul.mubr.msk.f32.gmra.mxu1 %vm278_vm1, %v5719_v1  ;;  %5008 = vmatprep.mubr.msk.f32.mxu0 %vm278_vm1, %v5728_v5  ;;  %v5765_v5 = vld [vmem:[%s5410_s26 + $0xd8] sm:$0xff]  ;;  %7133 = vst [vmem:[#allocation19_spill] sm:$0xff] %v5768_v2 }
  0x4d   : > { %4958 = vmatprep.mubr.msk.f32.mxu1 %vm278_vm1, %v5725_v3 }
  0x4f   : > { %5009 = vmatmul.mubr.msk.f32.gmra.mxu0 %vm278_vm1, %v5742_v10  ;;  %v5782_v10 = vld [vmem:[%s5410_s26 + $0xe2] sm:$0xff] }
  0x50   : > { %4959 = vmatmul.mubr.msk.f32.gmra.mxu1 %vm278_vm1, %v5739_v9  ;;  %5011 = vmatprep.mubr.msk.f32.mxu0 %vm278_vm1, %v5748_v38  ;;  %v5779_v38 = vld [vmem:[%s5410_s26 + $0xe0] sm:$0xff]  ;;  %7134 = vst [vmem:[#allocation20_spill] sm:$0xff] %v5782_v10 }
  0x51   : > { %4961 = vmatprep.mubr.msk.f32.mxu1 %vm278_vm1, %v5745_v37 }
  0x53   : > { %5012 = vmatmul.mubr.msk.f32.gmra.mxu0 %vm278_vm1, %v5762_v40  ;;  %v5802_v40 = vld [vmem:[%s5410_s26 + $0xfa] sm:$0xff] }
  0x54   : > { %4962 = vmatmul.mubr.msk.f32.gmra.mxu1 %vm278_vm1, %v5759_v39  ;;  %5014 = vmatprep.mubr.msk.f32.mxu0 %vm278_vm1, %v5768_v2  ;;  %v5799_v2 = vld [vmem:[%s5410_s26 + $0xf8] sm:$0xff]  ;;  %7136 = vst [vmem:[#allocation22_spill] sm:$0xff] %v5802_v40 }
  0x55   : > { %4964 = vmatprep.mubr.msk.f32.mxu1 %vm278_vm1, %v5765_v5 }
  0x57   : > { %5015 = vmatmul.mubr.msk.f32.gmra.mxu0 %vm278_vm1, %v5782_v10  ;;  %v5822_v10 = vld [vmem:[%s5410_s26 + $0x112] sm:$0xff] }
  0x58   : > { %4965 = vmatmul.mubr.msk.f32.gmra.mxu1 %vm278_vm1, %v5779_v38  ;;  %5017 = vmatprep.mubr.msk.f32.mxu0 %vm278_vm1, %v5788_v62  ;;  %v5819_v62 = vld [vmem:[%s5410_s26 + $0x110] sm:$0xff]  ;;  %7138 = vst [vmem:[#allocation24_spill] sm:$0xff] %v5822_v10 }
  0x59   : > { %4967 = vmatprep.mubr.msk.f32.mxu1 %vm278_vm1, %v5785_v0 }
  0x5b   : > { %5018 = vmatmul.mubr.msk.f32.gmra.mxu0 %vm278_vm1, %v5802_v40  ;;  %v5842_v40 = vld [vmem:[%s5410_s26 + $0x12a] sm:$0xff] }
  0x5c   : > { %4968 = vmatmul.mubr.msk.f32.gmra.mxu1 %vm278_vm1, %v5799_v2  ;;  %5020 = vmatprep.mubr.msk.f32.mxu0 %vm278_vm1, %v5808_v58  ;;  %v5839_v58 = vld [vmem:[%s5410_s26 + $0x128] sm:$0xff]  ;;  %7140 = vst [vmem:[#allocation26_spill] sm:$0xff] %v5842_v40 }
  0x5d   : > { %4970 = vmatprep.mubr.msk.f32.mxu1 %vm278_vm1, %v5805_v60 }
  0x5f   : > { %5021 = vmatmul.mubr.msk.f32.gmra.mxu0 %vm278_vm1, %v5822_v10  ;;  %v5862_v10 = vld [vmem:[%s5410_s26 + $0x142] sm:$0xff] }
  0x60   : > { %4971 = vmatmul.mubr.msk.f32.gmra.mxu1 %vm278_vm1, %v5819_v62  ;;  %5023 = vmatprep.mubr.msk.f32.mxu0 %vm278_vm1, %v5828_v54  ;;  %v5859_v54 = vld [vmem:[%s5410_s26 + $0x140] sm:$0xff]  ;;  %7142 = vst [vmem:[#allocation28_spill] sm:$0xff] %v5862_v10 }
  0x61   : > { %4973 = vmatprep.mubr.msk.f32.mxu1 %vm278_vm1, %v5825_v56 }
  0x63   : > { %5024 = vmatmul.mubr.msk.f32.gmra.mxu0 %vm278_vm1, %v5842_v40  ;;  %v5882_v40 = vld [vmem:[%s5410_s26 + $0x15a] sm:$0xff] }
  0x64   : > { %4974 = vmatmul.mubr.msk.f32.gmra.mxu1 %vm278_vm1, %v5839_v58  ;;  %5026 = vmatprep.mubr.msk.f32.mxu0 %vm278_vm1, %v5848_v50  ;;  %v5879_v50 = vld [vmem:[%s5410_s26 + $0x158] sm:$0xff]  ;;  %7144 = vst [vmem:[#allocation30_spill] sm:$0xff] %v5882_v40 }
  0x65   : > { %4976 = vmatprep.mubr.msk.f32.mxu1 %vm278_vm1, %v5845_v52 }
  0x67   : > { %5027 = vmatmul.mubr.msk.f32.gmra.mxu0 %vm278_vm1, %v5862_v10  ;;  %v5902_v10 = vld [vmem:[%s5410_s26 + $0x172] sm:$0xff] }
  0x68   : > { %4977 = vmatmul.mubr.msk.f32.gmra.mxu1 %vm278_vm1, %v5859_v54  ;;  %5029 = vmatprep.mubr.msk.f32.mxu0 %vm278_vm1, %v5868_v46  ;;  %v5899_v46 = vld [vmem:[%s5410_s26 + $0x170] sm:$0xff]  ;;  %7146 = vst [vmem:[#allocation32_spill] sm:$0xff] %v5902_v10 }
  0x69   : > { %4979 = vmatprep.mubr.msk.f32.mxu1 %vm278_vm1, %v5865_v48 }
  0x6b   : > { %5030 = vmatmul.mubr.msk.f32.gmra.mxu0 %vm278_vm1, %v5882_v40 }
  0x6c   : > { %4980 = vmatmul.mubr.msk.f32.gmra.mxu1 %vm278_vm1, %v5879_v50  ;;  %5032 = vmatprep.mubr.msk.f32.mxu0 %vm278_vm1, %v5888_v36  ;;  %v5919_v36 = vld [vmem:[%s7052_s1 + $0x1c] sm:$0xf] }
  0x6d   : > { %4982 = vmatprep.mubr.msk.f32.mxu1 %vm278_vm1, %v5885_v42 }
  0x6f   : > { %5033 = vmatmul.mubr.msk.f32.gmra.mxu0 %vm278_vm1, %v5902_v10  ;;  %v5924_v10 = vld [vmem:[%s7052_s1 + $0x20] sm:$0xf] }
  0x70   : > { %4983 = vmatmul.mubr.msk.f32.gmra.mxu1 %vm278_vm1, %v5899_v46  ;;  %5087 = vmatprep.mubr.msk.f32.mxu0 %vm278_vm1, %v5424_v7  ;;  %v7148_v7 = vld [vmem:[#allocation2_spill] sm:$0xff] }
  0x71   : > { %5037 = vmatprep.mubr.msk.f32.mxu1 %vm278_vm1, %v5589_v41 }
  0x73   : > { %5088 = vmatmul.mubr.msk.f32.vlgmr.msra.gmra.mxu0 %vm278_vm1, %v5445_v11  ;;  %v6060_v11 = vld [vmem:[%s5410_s26 + $0x189] sm:$0xff] }
  0x74   : > { %5038 = vmatmul.mubr.msk.f32.vlgmr.msra.gmra.mxu1 %vm278_vm1, %v5611_v45  ;;  %5186 = vmatpush3.msk.msra.mxu0 %vm375_vm0, %v5604_v44  ;;  %7149 = vst [vmem:[#allocation2_spill] sm:$0xff] %v6060_v11  ;;  %v7167_v44 = vld [vmem:[#allocation20_spill] sm:$0xff]  ;;  %v7168_v45 = vld [vmem:[#allocation21_spill] sm:$0xff] }
  0x75   : > { %5136 = vmatpush3.msk.msra.mxu1 %vm375_vm0, %v5599_v43  ;;  %5040 = vmatprep.mubr.msk.f32.mxu1 %vm278_vm1, %v5621_v47 }
  0x76   : > { %5090 = vmatprep.mubr.msk.f32.mxu0 %vm278_vm1, %v5455_v13  ;;  %5235 = vmatprep.subr.msk.mxu1 %vm375_vm0, %v5919_v36 }
  0x77   : > { %5285 = vmatprep.subr.msk.mxu0 %vm375_vm0, %v5924_v10  ;;  %5091 = vmatmul.mubr.msk.f32.gmra.mxu0 %vm278_vm1, %v5473_v15 }
  0x78   : > { %5041 = vmatmul.mubr.msk.f32.gmra.mxu1 %vm278_vm1, %v5639_v49  ;;  %5093 = vmatprep.mubr.msk.f32.mxu0 %vm278_vm1, %v5479_v17 }
  0x79   : > { %5043 = vmatprep.mubr.msk.f32.mxu1 %vm278_vm1, %v5645_v51 }
  0x7b   : > { %5094 = vmatmul.mubr.msk.f32.gmra.mxu0 %vm278_vm1, %v5493_v19 }
  0x7c   : > { %5044 = vmatmul.mubr.msk.f32.gmra.mxu1 %vm278_vm1, %v5659_v53  ;;  %5096 = vmatprep.mubr.msk.f32.mxu0 %vm278_vm1, %v5499_v21 }
  0x7d   : > { %5046 = vmatprep.mubr.msk.f32.mxu1 %vm278_vm1, %v5665_v55 }
  0x7f   : > { %5097 = vmatmul.mubr.msk.f32.gmra.mxu0 %vm278_vm1, %v5513_v23 }
  0x80   : > { %5047 = vmatmul.mubr.msk.f32.gmra.mxu1 %vm278_vm1, %v5679_v57  ;;  %5099 = vmatprep.mubr.msk.f32.mxu0 %vm278_vm1, %v5519_v25 }
  0x81   : > { %5049 = vmatprep.mubr.msk.f32.mxu1 %vm278_vm1, %v5685_v59 }
  0x83   : > { %5100 = vmatmul.mubr.msk.f32.gmra.mxu0 %vm278_vm1, %v5533_v27 }
  0x84   : > { %5050 = vmatmul.mubr.msk.f32.gmra.mxu1 %vm278_vm1, %v5699_v61  ;;  %5102 = vmatprep.mubr.msk.f32.mxu0 %vm278_vm1, %v5539_v29  ;;  %v7159_v29 = vld [vmem:[#allocation12_spill] sm:$0xff] }
  0x85   : > { %5052 = vmatprep.mubr.msk.f32.mxu1 %vm278_vm1, %v5705_v63 }
  0x87   : > { %5103 = vmatmul.mubr.msk.f32.gmra.mxu0 %vm278_vm1, %v5553_v31  ;;  %v7161_v31 = vld [vmem:[#allocation14_spill] sm:$0xff] }
  0x88   : > { %5053 = vmatmul.mubr.msk.f32.gmra.mxu1 %vm278_vm1, %v5719_v1  ;;  %5105 = vmatprep.mubr.msk.f32.mxu0 %vm278_vm1, %v5559_v33  ;;  %v7163_v33 = vld [vmem:[#allocation16_spill] sm:$0xff] }
  0x89   : > { %5055 = vmatprep.mubr.msk.f32.mxu1 %vm278_vm1, %v5725_v3 }
  0x8b   : > { %5106 = vmatmul.mubr.msk.f32.gmra.mxu0 %vm278_vm1, %v5573_v35  ;;  %v7165_v35 = vld [vmem:[#allocation18_spill] sm:$0xff] }
  0x8c   : > { %5056 = vmatmul.mubr.msk.f32.gmra.mxu1 %vm278_vm1, %v5739_v9  ;;  %5108 = vmatprep.mubr.msk.f32.mxu0 %vm278_vm1, %v5414_v4  ;;  %v6043_v4 = vld [vmem:[%s5410_s26 + $0x180] sm:$0xff] }
  0x8d   : > { %5058 = vmatprep.mubr.msk.f32.mxu1 %vm278_vm1, %v5745_v37 }
  0x8f   : > { %5109 = vmatmul.mubr.msk.f32.gmra.mxu0 %vm278_vm1, %v5421_v6  ;;  %v6046_v6 = vld [vmem:[%s5410_s26 + $0x181] sm:$0xff] }
  0x90   : > { %5059 = vmatmul.mubr.msk.f32.gmra.mxu1 %vm278_vm1, %v5759_v39  ;;  %5111 = vmatprep.mubr.msk.f32.mxu0 %vm278_vm1, %v5427_v8  ;;  %7147 = vst [vmem:[#allocation33_spill] sm:$0xff] %v6046_v6  ;;  %v6057_v8 = vld [vmem:[%s5410_s26 + $0x188] sm:$0xff] }
  0x91   : > { %5061 = vmatprep.mubr.msk.f32.mxu1 %vm278_vm1, %v5765_v5 }
  0x93   : > { %5112 = vmatmul.mubr.msk.f32.gmra.mxu0 %vm278_vm1, %v5448_v12  ;;  %v7150_v12 = vld [vmem:[#allocation3_spill] sm:$0xff] }
  0x94   : > { %5062 = vmatmul.mubr.msk.f32.gmra.mxu1 %vm278_vm1, %v5779_v38  ;;  %5114 = vmatprep.mubr.msk.f32.mxu0 %vm278_vm1, %v5458_v14  ;;  %v7151_v14 = vld [vmem:[#allocation4_spill] sm:$0xff] }
  0x95   : > { %5064 = vmatprep.mubr.msk.f32.mxu1 %vm278_vm1, %v5785_v0 }
  0x97   : > { %5115 = vmatmul.mubr.msk.f32.gmra.mxu0 %vm278_vm1, %v5476_v16  ;;  %v7152_v16 = vld [vmem:[#allocation5_spill] sm:$0xff] }
  0x98   : > { %5065 = vmatmul.mubr.msk.f32.gmra.mxu1 %vm278_vm1, %v5799_v2  ;;  %5117 = vmatprep.mubr.msk.f32.mxu0 %vm278_vm1, %v5482_v18  ;;  %v7153_v18 = vld [vmem:[#allocation6_spill] sm:$0xff] }
  0x99   : > { %5067 = vmatprep.mubr.msk.f32.mxu1 %vm278_vm1, %v5805_v60 }
  0x9b   : > { %5118 = vmatmul.mubr.msk.f32.gmra.mxu0 %vm278_vm1, %v5496_v20  ;;  %v7154_v20 = vld [vmem:[#allocation7_spill] sm:$0xff] }
  0x9c   : > { %5068 = vmatmul.mubr.msk.f32.gmra.mxu1 %vm278_vm1, %v5819_v62  ;;  %5120 = vmatprep.mubr.msk.f32.mxu0 %vm278_vm1, %v5502_v22  ;;  %v7155_v22 = vld [vmem:[#allocation8_spill] sm:$0xff] }
  0x9d   : > { %5070 = vmatprep.mubr.msk.f32.mxu1 %vm278_vm1, %v5825_v56 }
  0x9f   : > { %5121 = vmatmul.mubr.msk.f32.gmra.mxu0 %vm278_vm1, %v5516_v24  ;;  %v7156_v24 = vld [vmem:[#allocation9_spill] sm:$0xff] }
  0xa0   : > { %5071 = vmatmul.mubr.msk.f32.gmra.mxu1 %vm278_vm1, %v5839_v58  ;;  %5123 = vmatprep.mubr.msk.f32.mxu0 %vm278_vm1, %v5522_v26  ;;  %v7157_v26 = vld [vmem:[#allocation10_spill] sm:$0xff] }
  0xa1   : > { %5073 = vmatprep.mubr.msk.f32.mxu1 %vm278_vm1, %v5845_v52 }
  0xa3   : > { %5124 = vmatmul.mubr.msk.f32.gmra.mxu0 %vm278_vm1, %v5536_v28  ;;  %v7158_v28 = vld [vmem:[#allocation11_spill] sm:$0xff] }
  0xa4   : > { %5074 = vmatmul.mubr.msk.f32.gmra.mxu1 %vm278_vm1, %v5859_v54  ;;  %5126 = vmatprep.mubr.msk.f32.mxu0 %vm278_vm1, %v5542_v30  ;;  %v7160_v30 = vld [vmem:[#allocation13_spill] sm:$0xff] }
  0xa5   : > { %5076 = vmatprep.mubr.msk.f32.mxu1 %vm278_vm1, %v5865_v48 }
  0xa7   : > { %5127 = vmatmul.mubr.msk.f32.gmra.mxu0 %vm278_vm1, %v5556_v32  ;;  %v7162_v32 = vld [vmem:[#allocation15_spill] sm:$0xff] }
  0xa8   : > { %5077 = vmatmul.mubr.msk.f32.gmra.mxu1 %vm278_vm1, %v5879_v50  ;;  %5129 = vmatprep.mubr.msk.f32.mxu0 %vm278_vm1, %v5562_v34  ;;  %v7164_v34 = vld [vmem:[#allocation17_spill] sm:$0xff] }
  0xa9   : > { %5079 = vmatprep.mubr.msk.f32.mxu1 %vm278_vm1, %v5885_v42 }
  0xab   : > { %5130 = vmatmul.mubr.msk.f32.gmra.mxu0 %vm278_vm1, %v7148_v7 }
  0xac   : > { %5080 = vmatmul.mubr.msk.f32.gmra.mxu1 %vm278_vm1, %v5899_v46  ;;  %5132 = vmatprep.mubr.msk.f32.mxu0 %vm278_vm1, %v6046_v6  ;;  %v4383_v6 = vld [vmem:[%s5410_s26 + $0x198] sm:$0xff] }
  0xad   : > { %5082 = vmatprep.mubr.msk.f32.mxu1 %vm278_vm1, %v6043_v4 }
  0xaf   : > { %5133 = vmatmul.mubr.msk.f32.gmra.mxu0 %vm278_vm1, %v6060_v11  ;;  %v6235_v11 = vld [vmem:[%s5410_s26 + $0x182] sm:$0xff] }
  0xb0   : > { %5083 = vmatmul.mubr.msk.f32.gmra.mxu1 %vm278_vm1, %v6057_v8  ;;  %5187 = vmatprep.mubr.msk.f32.mxu0 %vm278_vm1, %v5621_v47  ;;  %7182 = vst [vmem:[#allocation7_spill] sm:$0xff] %v6235_v11 }
  0xb1   : > { %5137 = vmatprep.mubr.msk.f32.mxu1 %vm278_vm1, %v7150_v12 }
  0xb3   : > { %5188 = vmatmul.mubr.msk.f32.vlgmr.msra.gmra.mxu0 %vm278_vm1, %v5639_v49 }
  0xb4   : > { %5138 = vmatmul.mubr.msk.f32.vlgmr.msra.gmra.mxu1 %vm278_vm1, %v7151_v14  ;;  %5286 = vmatpush3.msk.msra.mxu0 %vm375_vm0, %v5924_v10 }
  0xb5   : > { %5236 = vmatpush3.msk.msra.mxu1 %vm375_vm0, %v5919_v36  ;;  %5140 = vmatprep.mubr.msk.f32.mxu1 %vm278_vm1, %v7152_v16  ;;  %v7166_v36 = vld [vmem:[#allocation19_spill] sm:$0xff] }
  0xb6   : > { %5190 = vmatprep.mubr.msk.f32.mxu0 %vm278_vm1, %v5645_v51 }
  0xb7   : > { %5191 = vmatmul.mubr.msk.f32.gmra.mxu0 %vm278_vm1, %v5659_v53 }
  0xb8   : > { %5141 = vmatmul.mubr.msk.f32.gmra.mxu1 %vm278_vm1, %v7153_v18  ;;  %5193 = vmatprep.mubr.msk.f32.mxu0 %vm278_vm1, %v5665_v55  ;;  %v7169_v55 = vld [vmem:[#allocation22_spill] sm:$0xff] }
  0xb9   : > { %5143 = vmatprep.mubr.msk.f32.mxu1 %vm278_vm1, %v7154_v20 }
  0xbb   : > { %5194 = vmatmul.mubr.msk.f32.gmra.mxu0 %vm278_vm1, %v5679_v57  ;;  %v7170_v57 = vld [vmem:[#allocation23_spill] sm:$0xff] }
  0xbc   : > { %5144 = vmatmul.mubr.msk.f32.gmra.mxu1 %vm278_vm1, %v7155_v22  ;;  %5196 = vmatprep.mubr.msk.f32.mxu0 %vm278_vm1, %v5685_v59 }
  0xbd   : > { %5146 = vmatprep.mubr.msk.f32.mxu1 %vm278_vm1, %v7156_v24 }
  0xbf   : > { %5197 = vmatmul.mubr.msk.f32.gmra.mxu0 %vm278_vm1, %v5699_v61 }
  0xc0   : > { %5147 = vmatmul.mubr.msk.f32.gmra.mxu1 %vm278_vm1, %v7157_v26  ;;  %5199 = vmatprep.mubr.msk.f32.mxu0 %vm278_vm1, %v5705_v63 }
  0xc1   : > { %5149 = vmatprep.mubr.msk.f32.mxu1 %vm278_vm1, %v7158_v28 }
  0xc3   : > { %5200 = vmatmul.mubr.msk.f32.gmra.mxu0 %vm278_vm1, %v5719_v1 }
  0xc4   : > { %5150 = vmatmul.mubr.msk.f32.gmra.mxu1 %vm278_vm1, %v7159_v29  ;;  %5202 = vmatprep.mubr.msk.f32.mxu0 %vm278_vm1, %v5725_v3 }
  0xc5   : > { %5152 = vmatprep.mubr.msk.f32.mxu1 %vm278_vm1, %v7160_v30 }
  0xc7   : > { %5203 = vmatmul.mubr.msk.f32.gmra.mxu0 %vm278_vm1, %v5739_v9 }
  0xc8   : > { %5153 = vmatmul.mubr.msk.f32.gmra.mxu1 %vm278_vm1, %v7161_v31  ;;  %5205 = vmatprep.mubr.msk.f32.mxu0 %vm278_vm1, %v5745_v37 }
  0xc9   : > { %5155 = vmatprep.mubr.msk.f32.mxu1 %vm278_vm1, %v7162_v32 }
  0xcb   : > { %5206 = vmatmul.mubr.msk.f32.gmra.mxu0 %vm278_vm1, %v5759_v39 }
  0xcc   : > { %5156 = vmatmul.mubr.msk.f32.gmra.mxu1 %vm278_vm1, %v7163_v33  ;;  %5208 = vmatprep.mubr.msk.f32.mxu0 %vm278_vm1, %v5765_v5  ;;  %v7173_v5 = vld [vmem:[#allocation26_spill] sm:$0xff] }
  0xcd   : > { %5158 = vmatprep.mubr.msk.f32.mxu1 %vm278_vm1, %v7164_v34 }
  0xcf   : > { %5209 = vmatmul.mubr.msk.f32.gmra.mxu0 %vm278_vm1, %v5779_v38  ;;  %v7176_v38 = vld [vmem:[#allocation28_spill] sm:$0xff] }
  0xd0   : > { %5159 = vmatmul.mubr.msk.f32.gmra.mxu1 %vm278_vm1, %v7165_v35  ;;  %5211 = vmatprep.mubr.msk.f32.mxu0 %vm278_vm1, %v5785_v0  ;;  %v7171_v0 = vld [vmem:[#allocation24_spill] sm:$0xff] }
  0xd1   : > { %5161 = vmatprep.mubr.msk.f32.mxu1 %vm278_vm1, %v7166_v36 }
  0xd3   : > { %v6138_v41 = vpop.f32.mrf.mxu0  ;;  %5212 = vmatmul.mubr.msk.f32.gmra.mxu0 %vm278_vm1, %v5799_v2 }
  0xd4   : > { %v6140_v43 = vpop.f32.mrf.mxu1  ;;  %5162 = vmatmul.mubr.msk.f32.gmra.mxu1 %vm278_vm1, %v7167_v44  ;;  %5214 = vmatprep.mubr.msk.f32.mxu0 %vm278_vm1, %v5805_v60 }
  0xd5   : > { %5164 = vmatprep.mubr.msk.f32.mxu1 %vm278_vm1, %v7168_v45  ;;  %v6150_v47 = vpop.f32.mrf.mxu0 }
  0xd6   : > { %v6152_v49 = vpop.f32.mrf.mxu1 }
  0xd7   : > { %v6154_v51 = vpop.f32.mrf.mxu0  ;;  %5215 = vmatmul.mubr.msk.f32.gmra.mxu0 %vm278_vm1, %v5819_v62  ;;  %v7172_v62 = vld [vmem:[#allocation25_spill] sm:$0xff] }
  0xd8   : > { %v6156_v53 = vpop.f32.mrf.mxu1  ;;  %5165 = vmatmul.mubr.msk.f32.gmra.mxu1 %vm278_vm1, %v7169_v55  ;;  %5217 = vmatprep.mubr.msk.f32.mxu0 %vm278_vm1, %v5825_v56 }
  0xd9   : > { %5167 = vmatprep.mubr.msk.f32.mxu1 %vm278_vm1, %v7170_v57  ;;  %v6166_v59 = vpop.f32.mrf.mxu0 }
  0xda   : > { %v6168_v60 = vpop.f32.mrf.mxu1 }
  0xdb   : > { %v6170_v61 = vpop.f32.mrf.mxu0  ;;  %5218 = vmatmul.mubr.msk.f32.gmra.mxu0 %vm278_vm1, %v5839_v58  ;;  %v7174_v58 = vld [vmem:[#allocation27_spill] sm:$0xff] }
  0xdc   : > { %v6172_v63 = vpop.f32.mrf.mxu1  ;;  %5168 = vmatmul.mubr.msk.f32.gmra.mxu1 %vm278_vm1, %v7171_v0  ;;  %5220 = vmatprep.mubr.msk.f32.mxu0 %vm278_vm1, %v5845_v52 }
  0xdd   : > { %5170 = vmatprep.mubr.msk.f32.mxu1 %vm278_vm1, %v7172_v62  ;;  %v6182_v56 = vpop.f32.mrf.mxu0 }
  0xde   : > { %v6184_v1 = vpop.f32.mrf.mxu1 }
  0xdf   : > { %v6186_v2 = vpop.f32.mrf.mxu0  ;;  %5221 = vmatmul.mubr.msk.f32.gmra.mxu0 %vm278_vm1, %v5859_v54  ;;  %v7177_v54 = vld [vmem:[#allocation29_spill] sm:$0xff] }
  0xe0   : > { %v6188_v3 = vpop.f32.mrf.mxu1  ;;  %5171 = vmatmul.mubr.msk.f32.gmra.mxu1 %vm278_vm1, %v7173_v5  ;;  %5223 = vmatprep.mubr.msk.f32.mxu0 %vm278_vm1, %v5865_v48 }
  0xe1   : > { %5173 = vmatprep.mubr.msk.f32.mxu1 %vm278_vm1, %v7174_v58  ;;  %v6198_v52 = vpop.f32.mrf.mxu0 }
  0xe2   : > { %v6200_v9 = vpop.f32.mrf.mxu1 }
  0xe3   : > { %v6202_v10 = vpop.f32.mrf.mxu0  ;;  %5224 = vmatmul.mubr.msk.f32.gmra.mxu0 %vm278_vm1, %v5879_v50  ;;  %v7180_v50 = vld [vmem:[#allocation31_spill] sm:$0xff] }
  0xe4   : > { %v6204_v37 = vpop.f32.mrf.mxu1  ;;  %5174 = vmatmul.mubr.msk.f32.gmra.mxu1 %vm278_vm1, %v7176_v38  ;;  %5226 = vmatprep.mubr.msk.f32.mxu0 %vm278_vm1, %v5885_v42 }
  0xe5   : > { %7175 = vst [vmem:[#allocation3_spill] sm:$0xff] %v6204_v37  ;;  %5176 = vmatprep.mubr.msk.f32.mxu1 %vm278_vm1, %v7177_v54  ;;  %v6214_v48 = vpop.f32.mrf.mxu0  ;;  %v7184_v37 = vld [vmem:[#allocation32_spill] sm:$0xff] }
  0xe6   : > { %v6216_v39 = vpop.f32.mrf.mxu1 }
  0xe7   : > { %7178 = vst [vmem:[#allocation4_spill] sm:$0xff] %v6216_v39  ;;  %v6218_v7 = vpop.f32.mrf.mxu0  ;;  %5227 = vmatmul.mubr.msk.f32.gmra.mxu0 %vm278_vm1, %v5899_v46  ;;  %v6250_v46 = vld [vmem:[%s5410_s26 + $0x18a] sm:$0xff] }
  0xe8   : > { %v6220_v12 = vpop.f32.mrf.mxu1  ;;  %5177 = vmatmul.mubr.msk.f32.gmra.mxu1 %vm278_vm1, %v5882_v40  ;;  %5229 = vmatprep.mubr.msk.f32.mxu0 %vm278_vm1, %v6043_v4  ;;  %7185 = vst [vmem:[#allocation9_spill] sm:$0xff] %v6250_v46  ;;  %v4384_v4 = vld [vmem:[%s5410_s26 + $0x1a0] sm:$0xff] }
  0xe9   : > { %7179 = vst [vmem:[#allocation5_spill] sm:$0xff] %v6220_v12  ;;  %5179 = vmatprep.mubr.msk.f32.mxu1 %vm278_vm1, %v7180_v50  ;;  %v6230_v42 = vpop.f32.mrf.mxu0 }
  0xea   : > { %v6232_v14 = vpop.f32.mrf.mxu1 }
  0xeb   : > { %7181 = vst [vmem:[#allocation6_spill] sm:$0xff] %v6232_v14  ;;  %v6238_v12 = vpop.f32.mrf.mxu0  ;;  %5230 = vmatmul.mubr.msk.f32.gmra.mxu0 %vm278_vm1, %v6057_v8 }
  0xec   : > { %v6240_v39 = vpop.f32.mrf.mxu1  ;;  %5180 = vmatmul.mubr.msk.f32.gmra.mxu1 %vm278_vm1, %v7184_v37  ;;  %5232 = vmatprep.mubr.msk.f32.mxu0 %vm278_vm1, %v4383_v6 }
  0xed   : > { %7183 = vst [vmem:[#allocation8_spill] sm:$0xff] %v6240_v39  ;;  %5182 = vmatprep.mubr.msk.f32.mxu1 %vm278_vm1, %v6235_v11  ;;  %v6253_v50 = vpop.f32.mrf.mxu0 }
  0xee   : > { %v6255_v14 = vpop.f32.mrf.mxu1 }
  0xef   : > { %7186 = vst [vmem:[#allocation10_spill] sm:$0xff] %v6255_v14  ;;  %v6257_v40 = vpop.f32.mrf.mxu0  ;;  %5233 = vmatmul.mubr.msk.f32.gmra.mxu0 %vm278_vm1, %v4384_v4 }
  0xf0   : > { %v6259_v39 = vpop.f32.mrf.mxu1  ;;  %5183 = vmatmul.mubr.msk.f32.gmra.mxu1 %vm278_vm1, %v6250_v46  ;;  %5287 = vmatprep.mubr.msk.f32.mxu0 %vm278_vm1, %v7152_v16 }
  0xf1   : > { %7187 = vst [vmem:[#allocation11_spill] sm:$0xff] %v6259_v39  ;;  %5237 = vmatprep.mubr.msk.f32.mxu1 %vm278_vm1, %v5455_v13  ;;  %v6268_v6 = vpop.f32.mrf.mxu0 }
  0xf2   : > { %v6270_v8 = vpop.f32.mrf.mxu1 }
  0xf3   : > { %7188 = vst [vmem:[#allocation12_spill] sm:$0xff] %v6270_v8  ;;  %v4989_v14 = vpop.f32.mrf.mxu0  ;;  %5288 = vmatmul.mubr.msk.f32.vlgmr.msra.gmra.mxu0 %vm278_vm1, %v7153_v18 }
  0xf4   : > { %v4939_v37 = vpop.f32.mrf.mxu1  ;;  %5238 = vmatmul.mubr.msk.f32.vlgmr.msra.gmra.mxu1 %vm278_vm1, %v5473_v15  ;;  %5290 = vmatprep.mubr.msk.f32.mxu0 %vm278_vm1, %v7154_v20 }
  0xf5   : > { %v775_v4 = vadd.f32 %v4939_v37, %v6138_v41  ;;  %5240 = vmatprep.mubr.msk.f32.mxu1 %vm278_vm1, %v5479_v17  ;;  %v1127_v16 = vpop.f32.mrf.mxu0  ;;  %v4429_v37 = vld [vmem:[%s5410_s26 + $0xa9] sm:$0xff] }
  0xf6   : > { %v769_v13 = vpop.f32.mrf.mxu1 }
  0xf7   : > { %v6281_v39 = vadd.f32 %v4989_v14, %v775_v4  ;;  %v770_v8 = vadd.f32 %v769_v13, %v6150_v47  ;;  %v4992_v11 = vpop.f32.mrf.mxu0  ;;  %5291 = vmatmul.mubr.msk.f32.gmra.mxu0 %vm278_vm1, %v7155_v22 }
  0xf8   : > { %v4942_v46 = vpop.f32.mrf.mxu1  ;;  %5241 = vmatmul.mubr.msk.f32.gmra.mxu1 %vm278_vm1, %v5493_v19  ;;  %5293 = vmatprep.mubr.msk.f32.mxu0 %vm278_vm1, %v7156_v24 }
  0xf9   : > { %v6288_v15 = vadd.f32 %v1127_v16, %v770_v8  ;;  %v785_v17 = vadd.f32 %v4942_v46, %v6154_v51  ;;  %5243 = vmatprep.mubr.msk.f32.mxu1 %vm278_vm1, %v5499_v21  ;;  %v1137_v20 = vpop.f32.mrf.mxu0  ;;  %v4427_v51 = vld [vmem:[%s5410_s26 + $0x91] sm:$0xff] }
  0xfa   : > { %v779_v18 = vpop.f32.mrf.mxu1  ;;  %v4430_v16 = vld [vmem:[%s5410_s26 + $0xb1] sm:$0xff] }
  0xfb   : > { %v6295_v41 = vadd.f32 %v4992_v11, %v785_v17  ;;  %v780_v19 = vadd.f32 %v779_v18, %v6166_v59  ;;  %v4995_v14 = vpop.f32.mrf.mxu0  ;;  %5294 = vmatmul.mubr.msk.f32.gmra.mxu0 %vm278_vm1, %v7157_v26  ;;  %v4431_v18 = vld [vmem:[%s5410_s26 + $0xc1] sm:$0xff] }
  0xfc   : > { %v4945_v47 = vpop.f32.mrf.mxu1  ;;  %5244 = vmatmul.mubr.msk.f32.gmra.mxu1 %vm278_vm1, %v5513_v23  ;;  %5296 = vmatprep.mubr.msk.f32.mxu0 %vm278_vm1, %v7158_v28 }
  0xfd   : > { %v6302_v22 = vadd.f32 %v1137_v20, %v780_v19  ;;  %v795_v21 = vadd.f32 %v4945_v47, %v6170_v61  ;;  %5246 = vmatprep.mubr.msk.f32.mxu1 %vm278_vm1, %v5519_v25  ;;  %v1147_v24 = vpop.f32.mrf.mxu0  ;;  %v4428_v61 = vld [vmem:[%s5410_s26 + $0x99] sm:$0xff] }
  0xfe   : > { %v789_v11 = vpop.f32.mrf.mxu1 }
  0xff   : > { %v6310_v59 = vadd.f32 %v4995_v14, %v795_v21  ;;  %v790_v23 = vadd.f32 %v789_v11, %v6182_v56  ;;  %v4998_v46 = vpop.f32.mrf.mxu0  ;;  %5297 = vmatmul.mubr.msk.f32.gmra.mxu0 %vm278_vm1, %v7159_v29  ;;  %v4432_v14 = vld [vmem:[%s5410_s26 + $0xc9] sm:$0xff]  ;;  %v4433_v11 = vld [vmem:[%s5410_s26 + $0xd9] sm:$0xff] }
 0x100   : > { %v4948_v26 = vpop.f32.mrf.mxu1  ;;  %5247 = vmatmul.mubr.msk.f32.gmra.mxu1 %vm278_vm1, %v5533_v27  ;;  %5299 = vmatprep.mubr.msk.f32.mxu0 %vm278_vm1, %v7160_v30 }
 0x101   : > { %v6317_v25 = vadd.f32 %v1147_v24, %v790_v23  ;;  %v805_v28 = vadd.f32 %v4948_v26, %v6186_v2  ;;  %5249 = vmatprep.mubr.msk.f32.mxu1 %vm278_vm1, %v4427_v51  ;;  %v1157_v8 = vpop.f32.mrf.mxu0  ;;  %v4434_v26 = vld [vmem:[%s5410_s26 + $0xe1] sm:$0xff] }
 0x102   : > { %v799_v56 = vpop.f32.mrf.mxu1 }
 0x103   : > { %v6325_v4 = vadd.f32 %v4998_v46, %v805_v28  ;;  %v800_v27 = vadd.f32 %v799_v56, %v6198_v52  ;;  %v5001_v13 = vpop.f32.mrf.mxu0  ;;  %5300 = vmatmul.mubr.msk.f32.gmra.mxu0 %vm278_vm1, %v7161_v31  ;;  %v4435_v28 = vld [vmem:[%s5410_s26 + $0xf1] sm:$0xff] }
 0x104   : > { %v4951_v29 = vpop.f32.mrf.mxu1  ;;  %5250 = vmatmul.mubr.msk.f32.gmra.mxu1 %vm278_vm1, %v4428_v61  ;;  %5302 = vmatprep.mubr.msk.f32.mxu0 %vm278_vm1, %v7162_v32 }
 0x105   : > { %v6331_v2 = vadd.f32 %v1157_v8, %v800_v27  ;;  %v815_v30 = vadd.f32 %v4951_v29, %v6202_v10  ;;  %5252 = vmatprep.mubr.msk.f32.mxu1 %vm278_vm1, %v4429_v37  ;;  %v1167_v52 = vpop.f32.mrf.mxu0  ;;  %v4436_v37 = vld [vmem:[%s5410_s26 + $0xf9] sm:$0xff]  ;;  %v4437_v29 = vld [vmem:[%s5410_s26 + $0x109] sm:$0xff] }
 0x106   : > { %v809_v17 = vpop.f32.mrf.mxu1 }
 0x107   : > { %v6339_v20 = vadd.f32 %v5001_v13, %v815_v30  ;;  %v810_v19 = vadd.f32 %v809_v17, %v6214_v48  ;;  %v5004_v47 = vpop.f32.mrf.mxu0  ;;  %5303 = vmatmul.mubr.msk.f32.gmra.mxu0 %vm278_vm1, %v7163_v33  ;;  %v4438_v17 = vld [vmem:[%s5410_s26 + $0x111] sm:$0xff] }
 0x108   : > { %v4954_v31 = vpop.f32.mrf.mxu1  ;;  %5253 = vmatmul.mubr.msk.f32.gmra.mxu1 %vm278_vm1, %v4430_v16  ;;  %5305 = vmatprep.mubr.msk.f32.mxu0 %vm278_vm1, %v7164_v34 }
 0x109   : > { %v6345_v10 = vadd.f32 %v1167_v52, %v810_v19  ;;  %v825_v32 = vadd.f32 %v4954_v31, %v6218_v7  ;;  %5255 = vmatprep.mubr.msk.f32.mxu1 %vm278_vm1, %v4431_v18  ;;  %v1177_v48 = vpop.f32.mrf.mxu0  ;;  %v4439_v18 = vld [vmem:[%s5410_s26 + $0x121] sm:$0xff] }
 0x10a   : > { %v819_v21 = vpop.f32.mrf.mxu1 }
 0x10b   : > { %v6353_v24 = vadd.f32 %v5004_v47, %v825_v32  ;;  %v820_v51 = vadd.f32 %v819_v21, %v6230_v42  ;;  %v5007_v23 = vpop.f32.mrf.mxu0  ;;  %5306 = vmatmul.mubr.msk.f32.gmra.mxu0 %vm278_vm1, %v7165_v35  ;;  %v4440_v32 = vld [vmem:[%s5410_s26 + $0x129] sm:$0xff]  ;;  %v4441_v21 = vld [vmem:[%s5410_s26 + $0x139] sm:$0xff] }
 0x10c   : > { %v4957_v33 = vpop.f32.mrf.mxu1  ;;  %5256 = vmatmul.mubr.msk.f32.gmra.mxu1 %vm278_vm1, %v4432_v14  ;;  %5308 = vmatprep.mubr.msk.f32.mxu0 %vm278_vm1, %v7166_v36 }
 0x10d   : > { %v6359_v7 = vadd.f32 %v1177_v48, %v820_v51  ;;  %v835_v34 = vadd.f32 %v4957_v33, %v6238_v12  ;;  %5258 = vmatprep.mubr.msk.f32.mxu1 %vm278_vm1, %v4433_v11  ;;  %v1187_v42 = vpop.f32.mrf.mxu0  ;;  %v4442_v33 = vld [vmem:[%s5410_s26 + $0x141] sm:$0xff] }
 0x10e   : > { %v829_v46 = vpop.f32.mrf.mxu1 }
 0x10f   : > { %v6367_v61 = vadd.f32 %v5007_v23, %v835_v34  ;;  %v830_v56 = vadd.f32 %v829_v46, %v6253_v50  ;;  %v5010_v8 = vpop.f32.mrf.mxu0  ;;  %5309 = vmatmul.mubr.msk.f32.gmra.mxu0 %vm278_vm1, %v7167_v44  ;;  %v4443_v34 = vld [vmem:[%s5410_s26 + $0x151] sm:$0xff] }
 0x110   : > { %v4960_v35 = vpop.f32.mrf.mxu1  ;;  %5259 = vmatmul.mubr.msk.f32.gmra.mxu1 %vm278_vm1, %v4434_v26  ;;  %5311 = vmatprep.mubr.msk.f32.mxu0 %vm278_vm1, %v7168_v45 }
 0x111   : > { %v6373_v12 = vadd.f32 %v1187_v42, %v830_v56  ;;  %v845_v36 = vadd.f32 %v4960_v35, %v6257_v40  ;;  %5261 = vmatprep.mubr.msk.f32.mxu1 %vm278_vm1, %v4435_v28  ;;  %v1197_v50 = vpop.f32.mrf.mxu0  ;;  %v4444_v28 = vld [vmem:[%s5410_s26 + $0x159] sm:$0xff]  ;;  %v4445_v35 = vld [vmem:[%s5410_s26 + $0x169] sm:$0xff] }
 0x112   : > { %v839_v27 = vpop.f32.mrf.mxu1 }
 0x113   : > { %v6381_v13 = vadd.f32 %v5010_v8, %v845_v36  ;;  %v840_v30 = vadd.f32 %v839_v27, %v6268_v6  ;;  %v5013_v16 = vpop.f32.mrf.mxu0  ;;  %5312 = vmatmul.mubr.msk.f32.gmra.mxu0 %vm278_vm1, %v7169_v55  ;;  %v4511_v8 = vld [vmem:[%s5410_s26 + $0x16a] sm:$0xff] }
 0x114   : > { %v4963_v44 = vpop.f32.mrf.mxu1  ;;  %5262 = vmatmul.mubr.msk.f32.gmra.mxu1 %vm278_vm1, %v4436_v37  ;;  %5314 = vmatprep.mubr.msk.f32.mxu0 %vm278_vm1, %v7170_v57 }
 0x115   : > { %v6387_v40 = vadd.f32 %v1197_v50, %v840_v30  ;;  %v855_v45 = vadd.f32 %v4963_v44, %v6140_v43  ;;  %5264 = vmatprep.mubr.msk.f32.mxu1 %vm278_vm1, %v4437_v29  ;;  %v1207_v6 = vpop.f32.mrf.mxu0  ;;  %v4446_v30 = vld [vmem:[%s5410_s26 + $0x171] sm:$0xff] }
 0x116   : > { %v849_v52 = vpop.f32.mrf.mxu1  ;;  %v4512_v44 = vld [vmem:[%s5410_s26 + $0x172] sm:$0xff] }
 0x117   : > { %v6395_v19 = vadd.f32 %v5013_v16, %v855_v45  ;;  %v850_v31 = vadd.f32 %v849_v52, %v6152_v49  ;;  %v5016_v47 = vpop.f32.mrf.mxu0  ;;  %5315 = vmatmul.mubr.msk.f32.gmra.mxu0 %vm278_vm1, %v7171_v0 }
 0x118   : > { %v4966_v55 = vpop.f32.mrf.mxu1  ;;  %5265 = vmatmul.mubr.msk.f32.gmra.mxu1 %vm278_vm1, %v4438_v17  ;;  %5317 = vmatprep.mubr.msk.f32.mxu0 %vm278_vm1, %v7172_v62  ;;  %v7191_v17 = vld [vmem:[#allocation4_spill] sm:$0xff] }
 0x119   : > { %v6401_v43 = vadd.f32 %v1207_v6, %v850_v31  ;;  %v865_v57 = vadd.f32 %v4966_v55, %v6156_v53  ;;  %5267 = vmatprep.mubr.msk.f32.mxu1 %vm278_vm1, %v4439_v18  ;;  %v1217_v49 = vpop.f32.mrf.mxu0  ;;  %v7192_v55 = vld [vmem:[#allocation5_spill] sm:$0xff] }
 0x11a   : > { %v859_v14 = vpop.f32.mrf.mxu1 }
 0x11b   : > { %v6409_v48 = vadd.f32 %v5016_v47, %v865_v57  ;;  %v860_v11 = vadd.f32 %v859_v14, %v6168_v60  ;;  %v5019_v51 = vpop.f32.mrf.mxu0  ;;  %5318 = vmatmul.mubr.msk.f32.gmra.mxu0 %vm278_vm1, %v7173_v5  ;;  %v7193_v57 = vld [vmem:[#allocation33_spill] sm:$0xff] }
 0x11c   : > { %v4969_v0 = vpop.f32.mrf.mxu1  ;;  %5268 = vmatmul.mubr.msk.f32.gmra.mxu1 %vm278_vm1, %v4440_v32  ;;  %5320 = vmatprep.mubr.msk.f32.mxu0 %vm278_vm1, %v7174_v58  ;;  %v7194_v32 = vld [vmem:[#allocation7_spill] sm:$0xff] }
 0x11d   : > { %v6415_v53 = vadd.f32 %v1217_v49, %v860_v11  ;;  %v875_v62 = vadd.f32 %v4969_v0, %v6172_v63  ;;  %5270 = vmatprep.mubr.msk.f32.mxu1 %vm278_vm1, %v4441_v21  ;;  %v1227_v60 = vpop.f32.mrf.mxu0  ;;  %v4449_v21 = vld [vmem:[%s5410_s26 + $0x199] sm:$0xff] }
 0x11e   : > { %v869_v23 = vpop.f32.mrf.mxu1  ;;  %v4515_v11 = vld [vmem:[%s5410_s26 + $0x19a] sm:$0xff] }
 0x11f   : > { %v6423_v26 = vadd.f32 %v5019_v51, %v875_v62  ;;  %v870_v5 = vadd.f32 %v869_v23, %v6184_v1  ;;  %v5022_v42 = vpop.f32.mrf.mxu0  ;;  %5321 = vmatmul.mubr.msk.f32.gmra.mxu0 %vm278_vm1, %v7176_v38  ;;  %v7195_v51 = vld [vmem:[#allocation6_spill] sm:$0xff] }
 0x120   : > { %v4972_v46 = vpop.f32.mrf.mxu1  ;;  %5271 = vmatmul.mubr.msk.f32.gmra.mxu1 %vm278_vm1, %v4442_v33  ;;  %5323 = vmatprep.mubr.msk.f32.mxu0 %vm278_vm1, %v7177_v54  ;;  %v7190_v54 = vld [vmem:[#allocation3_spill] sm:$0xff] }
 0x121   : > { %v6429_v63 = vadd.f32 %v1227_v60, %v870_v5  ;;  %v885_v58 = vadd.f32 %v4972_v46, %v6188_v3  ;;  %5273 = vmatprep.mubr.msk.f32.mxu1 %vm278_vm1, %v4443_v34  ;;  %v1237_v56 = vpop.f32.mrf.mxu0  ;;  %v7189_v3 = vld [vmem:[#allocation30_spill] sm:$0xff]  ;;  %v7197_v34 = vld [vmem:[#allocation9_spill] sm:$0xff]  ;;  %v7198_v46 = vld [vmem:[#allocation8_spill] sm:$0xff] }
 0x122   : > { %v879_v1 = vpop.f32.mrf.mxu1  ;;  %v7196_v60 = vld [vmem:[#allocation2_spill] sm:$0xff] }
 0x123   : > { %v6438_v36 = vadd.f32 %v5022_v42, %v885_v58  ;;  %v880_v38 = vadd.f32 %v879_v1, %v6200_v9  ;;  %v5025_v27 = vpop.f32.mrf.mxu0  ;;  %5324 = vmatmul.mubr.msk.f32.gmra.mxu0 %vm278_vm1, %v7189_v3  ;;  %v4450_v58 = vld [vmem:[%s5410_s26 + $0x1a1] sm:$0xff] }
 0x124   : > { %v4975_v37 = vpop.f32.mrf.mxu1  ;;  %5274 = vmatmul.mubr.msk.f32.gmra.mxu1 %vm278_vm1, %v4444_v28  ;;  %5326 = vmatprep.mubr.msk.f32.mxu0 %vm278_vm1, %v4511_v8  ;;  %v4516_v28 = vld [vmem:[%s5410_s26 + $0x1a2] sm:$0xff] }
 0x125   : > { %v6444_v50 = vadd.f32 %v1237_v56, %v880_v38  ;;  %v895_v29 = vadd.f32 %v4975_v37, %v7190_v54  ;;  %5276 = vmatprep.mubr.msk.f32.mxu1 %vm278_vm1, %v4445_v35  ;;  %v1247_v16 = vpop.f32.mrf.mxu0  ;;  %v7199_v8 = vld [vmem:[#allocation10_spill] sm:$0xff]  ;;  %v7200_v54 = vld [vmem:[#allocation11_spill] sm:$0xff] }
 0x126   : > { %v889_v9 = vpop.f32.mrf.mxu1 }
 0x127   : > { %v6451_v45 = vadd.f32 %v5025_v27, %v895_v29  ;;  %v890_v52 = vadd.f32 %v889_v9, %v7191_v17  ;;  %v5028_v18 = vpop.f32.mrf.mxu0  ;;  %5327 = vmatmul.mubr.msk.f32.gmra.mxu0 %vm278_vm1, %v4512_v44 }
 0x128   : > { %v4978_v6 = vpop.f32.mrf.mxu1  ;;  %5277 = vmatmul.mubr.msk.f32.gmra.mxu1 %vm278_vm1, %v4446_v30  ;;  %5329 = vmatprep.mubr.msk.f32.mxu0 %vm278_vm1, %v7194_v32 }
 0x129   : > { %v6456_v31 = vadd.f32 %v1247_v16, %v890_v52  ;;  %v905_v47 = vadd.f32 %v4978_v6, %v7192_v55  ;;  %5279 = vmatprep.mubr.msk.f32.mxu1 %vm278_vm1, %v7193_v57  ;;  %v1257_v49 = vpop.f32.mrf.mxu0  ;;  %v7201_v16 = vld [vmem:[#allocation12_spill] sm:$0xff] }
 0x12a   : > { %v899_v14 = vpop.f32.mrf.mxu1 }
 0x12b   : > { %v6465_v0 = vadd.f32 %v5028_v18, %v905_v47  ;;  %v900_v62 = vadd.f32 %v899_v14, %v7195_v51  ;;  %v5031_v23 = vpop.f32.mrf.mxu0  ;;  %5330 = vmatmul.mubr.msk.f32.gmra.mxu0 %vm278_vm1, %v7197_v34 }
 0x12c   : > { %v4981_v33 = vpop.f32.mrf.mxu1  ;;  %5280 = vmatmul.mubr.msk.f32.gmra.mxu1 %vm278_vm1, %v7196_v60  ;;  %5332 = vmatprep.mubr.msk.f32.mxu0 %vm278_vm1, %v4515_v11 }
 0x12d   : > { %v6472_v5 = vadd.f32 %v1257_v49, %v900_v62  ;;  %v915_v42 = vadd.f32 %v4981_v33, %v7198_v46  ;;  %5282 = vmatprep.mubr.msk.f32.mxu1 %vm278_vm1, %v4449_v21  ;;  %v1267_v56 = vpop.f32.mrf.mxu0 }
 0x12e   : > { %v909_v1 = vpop.f32.mrf.mxu1 }
 0x12f   : > { %v6479_v35 = vadd.f32 %v5031_v23, %v915_v42  ;;  %v910_v38 = vadd.f32 %v909_v1, %v7199_v8  ;;  %v5034_v27 = vpop.f32.mrf.mxu0  ;;  %5333 = vmatmul.mubr.msk.f32.gmra.mxu0 %vm278_vm1, %v4516_v28 }
 0x130   : > { %v4984_v37 = vpop.f32.mrf.mxu1  ;;  %5283 = vmatmul.mubr.msk.f32.gmra.mxu1 %vm278_vm1, %v4450_v58 }
 0x131   : > { %v6484_v3 = vadd.f32 %v1267_v56, %v910_v38  ;;  %v925_v29 = vadd.f32 %v4984_v37, %v7200_v54  ;;  %v1277_v44 = vpop.f32.mrf.mxu0 }
 0x132   : > { %v919_v30 = vpop.f32.mrf.mxu1 }
 0x133   : > { %v6487_v9 = vadd.f32 %v5034_v27, %v925_v29  ;;  %v920_v17 = vadd.f32 %v919_v30, %v7201_v16  ;;  %v5089_v6 = vpop.f32.mrf.mxu0 }
 0x134   : > { %v5039_v52 = vpop.f32.mrf.mxu1 }
 0x135   : > { %v6490_v18 = vadd.f32 %v1277_v44, %v920_v17  ;;  %v1678_v55 = vadd.f32 %v5039_v52, %v6281_v39  ;;  %v1908_v57 = vpop.f32.mrf.mxu0 }
 0x136   : > { %v1518_v47 = vpop.f32.mrf.mxu1 }
 0x137   : > { %v6493_v32 = vadd.f32 %v5089_v6, %v1678_v55  ;;  %v1677_v14 = vadd.f32 %v1518_v47, %v6288_v15  ;;  %v5092_v21 = vpop.f32.mrf.mxu0 }
 0x138   : > { %v5042_v49 = vpop.f32.mrf.mxu1 }
 0x139   : > { %v6496_v11 = vadd.f32 %v1908_v57, %v1677_v14  ;;  %v1680_v51 = vadd.f32 %v5042_v49, %v6295_v41  ;;  %v1918_v33 = vpop.f32.mrf.mxu0 }
 0x13a   : > { %v1528_v62 = vpop.f32.mrf.mxu1 }
 0x13b   : > { %v6499_v23 = vadd.f32 %v5092_v21, %v1680_v51  ;;  %v1679_v60 = vadd.f32 %v1528_v62, %v6302_v22  ;;  %v5095_v39 = vpop.f32.mrf.mxu0 }
 0x13c   : > { %v5045_v34 = vpop.f32.mrf.mxu1 }
 0x13d   : > { %v6502_v46 = vadd.f32 %v1918_v33, %v1679_v60  ;;  %v1682_v42 = vadd.f32 %v5045_v34, %v6310_v59  ;;  %v1928_v15 = vpop.f32.mrf.mxu0 }
 0x13e   : > { %v1538_v58 = vpop.f32.mrf.mxu1 }
 0x13f   : > { %v6505_v28 = vadd.f32 %v5095_v39, %v1682_v42  ;;  %v1681_v1 = vadd.f32 %v1538_v58, %v6317_v25  ;;  %v5098_v41 = vpop.f32.mrf.mxu0 }
 0x140   : > { %v5048_v56 = vpop.f32.mrf.mxu1 }
 0x141   : > { %v6508_v8 = vadd.f32 %v1928_v15, %v1681_v1  ;;  %v1684_v38 = vadd.f32 %v5048_v56, %v6325_v4  ;;  %v1938_v22 = vpop.f32.mrf.mxu0 }
 0x142   : > { %v1548_v37 = vpop.f32.mrf.mxu1 }
 0x143   : > { %v6511_v27 = vadd.f32 %v5098_v41, %v1684_v38  ;;  %v1683_v54 = vadd.f32 %v1548_v37, %v6331_v2  ;;  %v5101_v59 = vpop.f32.mrf.mxu0 }
 0x144   : > { %v5051_v29 = vpop.f32.mrf.mxu1 }
 0x145   : > { %v6514_v30 = vadd.f32 %v1938_v22, %v1683_v54  ;;  %v1686_v44 = vadd.f32 %v5051_v29, %v6339_v20  ;;  %v1948_v25 = vpop.f32.mrf.mxu0 }
 0x146   : > { %v1558_v16 = vpop.f32.mrf.mxu1 }
 0x147   : > { %v6517_v17 = vadd.f32 %v5101_v59, %v1686_v44  ;;  %v1685_v52 = vadd.f32 %v1558_v16, %v6345_v10  ;;  %v5104_v4 = vpop.f32.mrf.mxu0 }
 0x148   : > { %v5054_v6 = vpop.f32.mrf.mxu1 }
 0x149   : > { %v6520_v55 = vadd.f32 %v1948_v25, %v1685_v52  ;;  %v1688_v47 = vadd.f32 %v5054_v6, %v6353_v24  ;;  %v1958_v2 = vpop.f32.mrf.mxu0 }
 0x14a   : > { %v1568_v57 = vpop.f32.mrf.mxu1 }
 0x14b   : > { %v6523_v14 = vadd.f32 %v5104_v4, %v1688_v47  ;;  %v1687_v49 = vadd.f32 %v1568_v57, %v6359_v7  ;;  %v5107_v20 = vpop.f32.mrf.mxu0 }
 0x14c   : > { %v5057_v21 = vpop.f32.mrf.mxu1 }
 0x14d   : > { %v6526_v51 = vadd.f32 %v1958_v2, %v1687_v49  ;;  %v1690_v62 = vadd.f32 %v5057_v21, %v6367_v61  ;;  %v1968_v10 = vpop.f32.mrf.mxu0 }
 0x14e   : > { %v1578_v33 = vpop.f32.mrf.mxu1 }
 0x14f   : > { %v6529_v60 = vadd.f32 %v5107_v20, %v1690_v62  ;;  %v1689_v34 = vadd.f32 %v1578_v33, %v6373_v12  ;;  %v5110_v24 = vpop.f32.mrf.mxu0 }
 0x150   : > { %v5060_v39 = vpop.f32.mrf.mxu1 }
 0x151   : > { %v6532_v42 = vadd.f32 %v1968_v10, %v1689_v34  ;;  %v1692_v58 = vadd.f32 %v5060_v39, %v6381_v13  ;;  %v1978_v7 = vpop.f32.mrf.mxu0 }
 0x152   : > { %v1588_v15 = vpop.f32.mrf.mxu1 }
 0x153   : > { %v6535_v1 = vadd.f32 %v5110_v24, %v1692_v58  ;;  %v1691_v56 = vadd.f32 %v1588_v15, %v6387_v40  ;;  %v5113_v61 = vpop.f32.mrf.mxu0 }
 0x154   : > { %v5063_v41 = vpop.f32.mrf.mxu1 }
 0x155   : > { %v6538_v38 = vadd.f32 %v1978_v7, %v1691_v56  ;;  %v1694_v37 = vadd.f32 %v5063_v41, %v6395_v19  ;;  %v1988_v12 = vpop.f32.mrf.mxu0 }
 0x156   : > { %v1598_v22 = vpop.f32.mrf.mxu1 }
 0x157   : > { %v6541_v54 = vadd.f32 %v5113_v61, %v1694_v37  ;;  %v1693_v29 = vadd.f32 %v1598_v22, %v6401_v43  ;;  %v5116_v13 = vpop.f32.mrf.mxu0 }
 0x158   : > { %v5066_v59 = vpop.f32.mrf.mxu1 }
 0x159   : > { %v6544_v44 = vadd.f32 %v1988_v12, %v1693_v29  ;;  %v1696_v16 = vadd.f32 %v5066_v59, %v6409_v48  ;;  %v1998_v40 = vpop.f32.mrf.mxu0 }
 0x15a   : > { %v1608_v25 = vpop.f32.mrf.mxu1 }
 0x15b   : > { %v6547_v52 = vadd.f32 %v5116_v13, %v1696_v16  ;;  %v1695_v6 = vadd.f32 %v1608_v25, %v6415_v53  ;;  %v5119_v19 = vpop.f32.mrf.mxu0 }
 0x15c   : > { %v5069_v4 = vpop.f32.mrf.mxu1 }
 0x15d   : > { %7202 = vst [vmem:[#allocation13_spill] sm:$0xff] %v6547_v52  ;;  %v6550_v47 = vadd.f32 %v1998_v40, %v1695_v6  ;;  %v1698_v57 = vadd.f32 %v5069_v4, %v6423_v26  ;;  %v2008_v43 = vpop.f32.mrf.mxu0 }
 0x15e   : > { %v1618_v2 = vpop.f32.mrf.mxu1 }
 0x15f   : > { %7203 = vst [vmem:[#allocation14_spill] sm:$0xff] %v6550_v47  ;;  %v6553_v49 = vadd.f32 %v5119_v19, %v1698_v57  ;;  %v1697_v21 = vadd.f32 %v1618_v2, %v6429_v63  ;;  %v5122_v48 = vpop.f32.mrf.mxu0 }
 0x160   : > { %v5072_v20 = vpop.f32.mrf.mxu1 }
 0x161   : > { %7204 = vst [vmem:[#allocation15_spill] sm:$0xff] %v6553_v49  ;;  %v6556_v62 = vadd.f32 %v2008_v43, %v1697_v21  ;;  %v1700_v33 = vadd.f32 %v5072_v20, %v6438_v36  ;;  %v2018_v53 = vpop.f32.mrf.mxu0 }
 0x162   : > { %v1628_v10 = vpop.f32.mrf.mxu1 }
 0x163   : > { %7205 = vst [vmem:[#allocation16_spill] sm:$0xff] %v6556_v62  ;;  %v6559_v34 = vadd.f32 %v5122_v48, %v1700_v33  ;;  %v1699_v39 = vadd.f32 %v1628_v10, %v6444_v50  ;;  %v5125_v26 = vpop.f32.mrf.mxu0 }
 0x164   : > { %v5075_v24 = vpop.f32.mrf.mxu1 }
 0x165   : > { %7206 = vst [vmem:[#allocation17_spill] sm:$0xff] %v6559_v34  ;;  %v6562_v58 = vadd.f32 %v2018_v53, %v1699_v39  ;;  %v1702_v15 = vadd.f32 %v5075_v24, %v6451_v45  ;;  %v2028_v63 = vpop.f32.mrf.mxu0 }
 0x166   : > { %v1638_v7 = vpop.f32.mrf.mxu1 }
 0x167   : > { %7207 = vst [vmem:[#allocation18_spill] sm:$0xff] %v6562_v58  ;;  %v6565_v56 = vadd.f32 %v5125_v26, %v1702_v15  ;;  %v1701_v41 = vadd.f32 %v1638_v7, %v6456_v31  ;;  %v5128_v36 = vpop.f32.mrf.mxu0 }
 0x168   : > { %v5078_v61 = vpop.f32.mrf.mxu1 }
 0x169   : > { %7208 = vst [vmem:[#allocation19_spill] sm:$0xff] %v6565_v56  ;;  %v6568_v37 = vadd.f32 %v2028_v63, %v1701_v41  ;;  %v1704_v22 = vadd.f32 %v5078_v61, %v6465_v0  ;;  %v2038_v50 = vpop.f32.mrf.mxu0 }
 0x16a   : > { %v1648_v12 = vpop.f32.mrf.mxu1 }
 0x16b   : > { %v6571_v29 = vadd.f32 %v5128_v36, %v1704_v22  ;;  %v1703_v59 = vadd.f32 %v1648_v12, %v6472_v5  ;;  %v5131_v45 = vpop.f32.mrf.mxu0 }
 0x16c   : > { %v5081_v13 = vpop.f32.mrf.mxu1 }
 0x16d   : > { %7209 = vst [vmem:[#allocation20_spill] sm:$0xff] %v6571_v29  ;;  %v6574_v16 = vadd.f32 %v2038_v50, %v1703_v59  ;;  %v1706_v25 = vadd.f32 %v5081_v13, %v6479_v35  ;;  %v2048_v31 = vpop.f32.mrf.mxu0 }
 0x16e   : > { %v1658_v40 = vpop.f32.mrf.mxu1 }
 0x16f   : > { %7210 = vst [vmem:[#allocation21_spill] sm:$0xff] %v6574_v16  ;;  %v6577_v6 = vadd.f32 %v5131_v45, %v1706_v25  ;;  %v1705_v4 = vadd.f32 %v1658_v40, %v6484_v3  ;;  %v5134_v0 = vpop.f32.mrf.mxu0 }
 0x170   : > { %v5084_v19 = vpop.f32.mrf.mxu1 }
 0x171   : > { %7211 = vst [vmem:[#allocation22_spill] sm:$0xff] %v6577_v6  ;;  %v6580_v57 = vadd.f32 %v2048_v31, %v1705_v4  ;;  %v1708_v2 = vadd.f32 %v5084_v19, %v6487_v9  ;;  %v2058_v5 = vpop.f32.mrf.mxu0 }
 0x172   : > { %v1668_v43 = vpop.f32.mrf.mxu1 }
 0x173   : > { %7212 = vst [vmem:[#allocation23_spill] sm:$0xff] %v6580_v57  ;;  %v6583_v21 = vadd.f32 %v5134_v0, %v1708_v2  ;;  %v1707_v20 = vadd.f32 %v1668_v43, %v6490_v18  ;;  %v6586_v35 = vpop.f32.mrf.mxu0 }
 0x174   : > { %v5139_v48 = vpop.f32.mrf.mxu1 }
 0x175   : > { %7213 = vst [vmem:[#allocation24_spill] sm:$0xff] %v6583_v21  ;;  %v6588_v33 = vadd.f32 %v2058_v5, %v1707_v20  ;;  %v6590_v53 = vpop.f32.mrf.mxu0 }
 0x176   : > { %v2298_v10 = vpop.f32.mrf.mxu1 }
 0x177   : > { %7214 = vst [vmem:[#allocation25_spill] sm:$0xff] %v6588_v33  ;;  %v6592_v39 = vpop.f32.mrf.mxu0 }
 0x178   : > { %v5142_v3 = vpop.f32.mrf.mxu1 }
 0x179   : > { %v6594_v26 = vpop.f32.mrf.mxu0 }
 0x17a   : > { %v2308_v24 = vpop.f32.mrf.mxu1 }
 0x17b   : > { %v6596_v15 = vpop.f32.mrf.mxu0 }
 0x17c   : > { %v5145_v9 = vpop.f32.mrf.mxu1 }
 0x17d   : > { %v6598_v63 = vpop.f32.mrf.mxu0 }
 0x17e   : > { %v2318_v7 = vpop.f32.mrf.mxu1 }
 0x17f   : > { %v6600_v41 = vpop.f32.mrf.mxu0 }
 0x180   : > { %v5148_v18 = vpop.f32.mrf.mxu1 }
 0x181   : > { %v6602_v36 = vpop.f32.mrf.mxu0 }
 0x182   : > { %v2328_v61 = vpop.f32.mrf.mxu1 }
 0x183   : > { %v6604_v12 = vpop.f32.mrf.mxu0 }
 0x184   : > { %v5151_v22 = vpop.f32.mrf.mxu1 }
 0x185   : > { %v6606_v59 = vpop.f32.mrf.mxu0 }
 0x186   : > { %v2338_v50 = vpop.f32.mrf.mxu1 }
 0x187   : > { %v6608_v45 = vpop.f32.mrf.mxu0 }
 0x188   : > { %v5154_v13 = vpop.f32.mrf.mxu1 }
 0x189   : > { %v6610_v40 = vpop.f32.mrf.mxu0 }
 0x18a   : > { %v2348_v25 = vpop.f32.mrf.mxu1 }
 0x18b   : > { %v6612_v4 = vpop.f32.mrf.mxu0 }
 0x18c   : > { %v5157_v31 = vpop.f32.mrf.mxu1 }
 0x18d   : > { %v6614_v0 = vpop.f32.mrf.mxu0 }
 0x18e   : > { %v2358_v19 = vpop.f32.mrf.mxu1  ;;  %7215 = vst [vmem:[#allocation26_spill] sm:$0xff] %v6614_v0 }
 0x18f   : > { %v6616_v43 = vpop.f32.mrf.mxu0 }
 0x190   : > { %v5160_v2 = vpop.f32.mrf.mxu1  ;;  %7216 = vst [vmem:[#allocation27_spill] sm:$0xff] %v6616_v43 }
 0x191   : > { %v6618_v20 = vpop.f32.mrf.mxu0 }
 0x192   : > { %v2368_v5 = vpop.f32.mrf.mxu1  ;;  %7217 = vst [vmem:[#allocation28_spill] sm:$0xff] %v6618_v20 }
 0x193   : > { %v6620_v21 = vpop.f32.mrf.mxu0 }
 0x194   : > { %v5163_v33 = vpop.f32.mrf.mxu1  ;;  %7218 = vst [vmem:[#allocation29_spill] sm:$0xff] %v6620_v21 }
 0x195   : > { %v6624_v6 = vpop.f32.mrf.mxu0 }
 0x196   : > { %v6622_v57 = vpop.f32.mrf.mxu1  ;;  %7219 = vst [vmem:[#allocation31_spill] sm:$0xff] %v6624_v6 }
 0x197   : > { %v6626_v29 = vpop.f32.mrf.mxu0 }
 0x198   : > { %v5166_v16 = vpop.f32.mrf.mxu1  ;;  %7220 = vst [vmem:[#allocation32_spill] sm:$0xff] %v6626_v29 }
 0x199   : > { %v6630_v58 = vpop.f32.mrf.mxu0 }
 0x19a   : > { %v6628_v56 = vpop.f32.mrf.mxu1  ;;  %7222 = vst [vmem:[#allocation3_spill] sm:$0xff] %v6630_v58 }
 0x19b   : > { %7221 = vst [vmem:[#allocation30_spill] sm:$0xff] %v6628_v56  ;;  %v6634_v62 = vpop.f32.mrf.mxu0 }
 0x19c   : > { %v6632_v34 = vpop.f32.mrf.mxu1  ;;  %7224 = vst [vmem:[#allocation5_spill] sm:$0xff] %v6634_v62 }
 0x19d   : > { %7223 = vst [vmem:[#allocation4_spill] sm:$0xff] %v6632_v34  ;;  %v6638_v20 = vpop.f32.mrf.mxu0 }
 0x19e   : > { %v6636_v49 = vpop.f32.mrf.mxu1  ;;  %7226 = vst [vmem:[#allocation7_spill] sm:$0xff] %v6638_v20 }
 0x19f   : > { %7225 = vst [vmem:[#allocation33_spill] sm:$0xff] %v6636_v49  ;;  %v6642_v47 = vpop.f32.mrf.mxu0 }
 0x1a0   : > { %v6640_v21 = vpop.f32.mrf.mxu1  ;;  %7228 = vst [vmem:[#allocation2_spill] sm:$0xff] %v6642_v47 }
 0x1a1   : > { %7227 = vst [vmem:[#allocation6_spill] sm:$0xff] %v6640_v21  ;;  %v6646_v43 = vpop.f32.mrf.mxu0 }
 0x1a2   : > { %v6644_v6 = vpop.f32.mrf.mxu1  ;;  %7230 = vst [vmem:[#allocation8_spill] sm:$0xff] %v6646_v43  ;;  %v2458_v43 = vadd.f32 %v5139_v48, %v6493_v32  ;;  %v2465_v48 = vadd.f32 %v2338_v50, %v6520_v55  ;;  %v2469_v55 = vadd.f32 %v2358_v19, %v6532_v42 }
 0x1a3   : > { %7229 = vst [vmem:[#allocation9_spill] sm:$0xff] %v6644_v6  ;;  %v6650_v56 = vpop.f32.mrf.mxu0 }
 0x1a4   : > { %v6648_v29 = vpop.f32.mrf.mxu1  ;;  %7232 = vst [vmem:[#allocation11_spill] sm:$0xff] %v6650_v56  ;;  %v2460_v56 = vadd.f32 %v5142_v3, %v6499_v23  ;;  %v2466_v23 = vadd.f32 %v5151_v22, %v6517_v17  ;;  %v7237_v22 = vld [vmem:[#allocation27_spill] sm:$0xff] }
 0x1a5   : > { %7231 = vst [vmem:[#allocation10_spill] sm:$0xff] %v6648_v29  ;;  %v2809_v34 = vpop.f32.mrf.mxu0  ;;  %v2457_v29 = vadd.f32 %v2298_v10, %v6496_v11  ;;  %v2849_v11 = vadd.f32 %v6586_v35, %v2458_v43  ;;  %v6750_v43 = vld [vmem:[%s7053_s2] ss:$0 sm:$0xff] }
 0x1a6   : > { %v2418_v58 = vpop.f32.mrf.mxu1  ;;  %v6712_v42 = vadd.f32 %v6604_v12, %v2466_v23 }
 0x1a7   : > { %v2481_v62 = vadd.f32 %v2418_v58, %v6568_v37  ;;  %v6655_v49 = vpop.f32.mrf.mxu0  ;;  %v2459_v58 = vadd.f32 %v2308_v24, %v6502_v46  ;;  %v2462_v37 = vadd.f32 %v5145_v9, %v6505_v28  ;;  %v2468_v46 = vadd.f32 %v5154_v13, %v6523_v14  ;;  %v7240_v13 = vld [vmem:[#allocation28_spill] sm:$0xff] }
 0x1a8   : > { %v6653_v0 = vpop.f32.mrf.mxu1  ;;  %v2848_v28 = vadd.f32 %v6590_v53, %v2457_v29  ;;  %v2472_v14 = vadd.f32 %v5160_v2, %v6535_v1  ;;  %v6715_v1 = vadd.f32 %v6606_v59, %v2465_v48  ;;  %v7246_v19 = vld [vmem:[#allocation6_spill] sm:$0xff] }
 0x1a9   : > { %v6657_v20 = vadd.f32 %v2809_v34, %v2481_v62  ;;  %v6661_v47 = vpop.f32.mrf.mxu0  ;;  %v2461_v62 = vadd.f32 %v2318_v7, %v6508_v8  ;;  %v2464_v34 = vadd.f32 %v5148_v18, %v6511_v27  ;;  %v2851_v8 = vadd.f32 %v6592_v39, %v2460_v56  ;;  %v7235_v7 = vld [vmem:[#allocation13_spill] sm:$0xff] }
 0x1aa   : > { %v6659_v21 = vpop.f32.mrf.mxu1  ;;  %7234 = vst [vmem:[#allocation34_spill] sm:$0xff] %v6661_v47  ;;  %v2467_v27 = vadd.f32 %v2348_v25, %v6526_v51  ;;  %v2850_v35 = vadd.f32 %v6594_v26, %v2459_v58  ;;  %v6693_v17 = vadd.f32 %v6596_v15, %v2462_v37  ;;  %v2471_v56 = vadd.f32 %v2368_v5, %v6538_v38  ;;  %v7241_v25 = vld [vmem:[#allocation15_spill] sm:$0xff]  ;;  %v7247_v58 = vld [vmem:[#allocation29_spill] sm:$0xff] }
 0x1ab   : > { %7233 = vst [vmem:[#allocation12_spill] sm:$0xff] %v6657_v20  ;;  %v6668_v52 = vpop.f32.mrf.mxu0  ;;  %v2463_v20 = vadd.f32 %v2328_v61, %v6514_v30  ;;  %v2470_v30 = vadd.f32 %v5157_v31, %v6529_v60  ;;  %v6698_v29 = vadd.f32 %v6598_v63, %v2461_v62  ;;  %v6701_v51 = vadd.f32 %v6600_v41, %v2464_v34  ;;  %v7236_v61 = vld [vmem:[#allocation26_spill] sm:$0xff]  ;;  %v7249_v34 = vld [vmem:[#allocation9_spill] sm:$0xff] }
 0x1ac   : > { %v6666_v6 = vpop.f32.mrf.mxu1  ;;  %v6718_v24 = vadd.f32 %v6608_v45, %v2468_v46  ;;  %v2474_v26 = vadd.f32 %v5163_v33, %v6541_v54  ;;  %v6722_v9 = vadd.f32 %v6610_v40, %v2467_v27  ;;  %v2473_v15 = vadd.f32 %v6622_v57, %v6544_v44  ;;  %v7238_v54 = vld [vmem:[#allocation14_spill] sm:$0xff]  ;;  %v7242_v44 = vld [vmem:[#allocation4_spill] sm:$0xff]  ;;  %v7244_v40 = vld [vmem:[#allocation33_spill] sm:$0xff] }
 0x1ad   : > { %v6677_v32 = vpop.f32.mrf.mxu0  ;;  %v6704_v60 = vadd.f32 %v6602_v36, %v2463_v20  ;;  %v6725_v38 = vadd.f32 %v6612_v4, %v2470_v30  ;;  %v2476_v63 = vadd.f32 %v5166_v16, %v7235_v7  ;;  %v6731_v36 = vadd.f32 %v7236_v61, %v2469_v55  ;;  %v7239_v33 = vld [vmem:[#allocation30_spill] sm:$0xff]  ;;  %v7243_v16 = vld [vmem:[#allocation16_spill] sm:$0xff]  ;;  %v7245_v4 = vld [vmem:[#allocation17_spill] sm:$0xff] }
 0x1ae   : > { %v6675_v47 = vpop.f32.mrf.mxu1  ;;  %v6734_v12 = vadd.f32 %v7237_v22, %v2472_v14  ;;  %v2475_v50 = vadd.f32 %v7239_v33, %v7238_v54  ;;  %v6739_v45 = vadd.f32 %v7240_v13, %v2471_v56  ;;  %v2478_v57 = vadd.f32 %v7242_v44, %v7241_v25  ;;  %v7248_v62 = vld [vmem:[#allocation18_spill] sm:$0xff]  ;;  %v7250_v46 = vld [vmem:[#allocation31_spill] sm:$0xff]  ;;  %v7251_v30 = vld [vmem:[#allocation32_spill] sm:$0xff] }
 0x1af   : > { %v6689_v3 = vpop.f32.mrf.mxu0  ;;  %v2477_v31 = vadd.f32 %v7244_v40, %v7243_v16  ;;  %v2480_v2 = vadd.f32 %v7246_v19, %v7245_v4  ;;  %v6753_v37 = vadd.f32 %v7247_v58, %v2474_v26  ;;  %v6759_v27 = vadd.f32 %v7250_v46, %v2473_v15  ;;  %v7252_v14 = vld [vmem:[#allocation19_spill] sm:$0xff]  ;;  %v7253_v56 = vld [vmem:[#allocation10_spill] sm:$0xff]  ;;  %v7256_v15 = vld [vmem:[#allocation5_spill] sm:$0xff] }
 0x1b0   : > { %v6687_v10 = vpop.f32.mrf.mxu1  ;;  %v6762_v55 = vadd.f32 %v7251_v30, %v2476_v63  ;;  %v2482_v7 = vadd.f32 %v7253_v56, %v7252_v14  ;;  %v7255_v54 = vld [vmem:[#allocation3_spill] sm:$0xff]  ;;  %v6773_v13 = vadd.f32 %v7256_v15, %v2478_v57  ;;  %v7258_v44 = vld [vmem:[#allocation2_spill] sm:$0xff]  ;;  %v7259_v40 = vld [vmem:[#allocation21_spill] sm:$0xff] }
 0x1b1   : > { %v6709_v39 = vpop.f32.mrf.mxu0  ;;  %v6769_v33 = vadd.f32 %v7255_v54, %v2475_v50  ;;  %v7257_v63 = vld [vmem:[#allocation7_spill] sm:$0xff]  ;;  %v6779_v16 = vadd.f32 %v7258_v44, %v2480_v2  ;;  %v7260_v57 = vld [vmem:[#allocation8_spill] sm:$0xff]  ;;  %v7262_v30 = vld [vmem:[#allocation34_spill] sm:$0xff] }
 0x1b2   : > { %v6707_v53 = vpop.f32.mrf.mxu1  ;;  %v6776_v25 = vadd.f32 %v7257_v63, %v2477_v31  ;;  %v7261_v2 = vld [vmem:[#allocation11_spill] sm:$0xff] }
 0x1b3   : > { %v5289_v41 = vpop.f32.mrf.mxu0 }
 0x1b4   : > { %v5239_v18 = vpop.f32.mrf.mxu1 }
 0x1b5   : > { %v3239_v59 = vadd.f32 %v5239_v18, %v2849_v11  ;;  %v3469_v20 = vpop.f32.mrf.mxu0  ;;  %v2479_v11 = vadd.f32 %v7249_v34, %v7248_v62  ;;  %v7254_v18 = vld [vmem:[#allocation20_spill] sm:$0xff] }
 0x1b6   : > { %v3079_v5 = vpop.f32.mrf.mxu1  ;;  %v2484_v26 = vadd.f32 %v6653_v0, %v7254_v18  ;;  %v2483_v0 = vadd.f32 %v6659_v21, %v7259_v40 }
 0x1b7   : > { %v3629_v23 = vadd.f32 %v5289_v41, %v3239_v59  ;;  %v3238_v48 = vadd.f32 %v3079_v5, %v2848_v28  ;;  %v5292_v22 = vpop.f32.mrf.mxu0  ;;  %v6791_v4 = vadd.f32 %v7260_v57, %v2479_v11  ;;  %v6795_v5 = vadd.f32 %v7261_v2, %v2482_v7 }
 0x1b8   : > { %v5242_v61 = vpop.f32.mrf.mxu1  ;;  %v6798_v21 = vadd.f32 %v6655_v49, %v2484_v26  ;;  %v6805_v14 = vadd.f32 %v7262_v30, %v2483_v0 }
 0x1b9   : > { %v3668_v41 = vadd.f32 %v6750_v43, %v3629_v23  ;;  %v3628_v28 = vadd.f32 %v3469_v20, %v3238_v48  ;;  %v3241_v59 = vadd.f32 %v5242_v61, %v2851_v8  ;;  %v3479_v50 = vpop.f32.mrf.mxu0  ;;  %v5355_v20 = vmov 0.0  }
 0x1ba   : > { %v3089_v8 = vpop.f32.mrf.mxu1 }
 0x1bb   : > { %vm3700_vm3 = vcmp.gt.f32.partialorder %v3668_v41, 0.3  ;;  %v3667_v31 = vadd.f32 %v6750_v43, %v3628_v28  ;;  %v3631_v19 = vadd.f32 %v5292_v22, %v3241_v59  ;;  %v3240_v62 = vadd.f32 %v3089_v8, %v2850_v35  ;;  %v5295_v23 = vpop.f32.mrf.mxu0 }
 0x1bc   : > { %v4553_v58 = vsel %vm3700_vm3, 1.0, %v5355_v20  ;;  %v5245_v34 = vpop.f32.mrf.mxu1  ;;  %v3829_v11 = vmul.f32 0.2, %v3668_v41 }
 0x1bd   : > { %3797 = vst.msk [vmem:[%s6788_s20 + $0x8] sm:$0xff] %vm3795_vm2, %v4553_v58  ;;  %v3861_v48 = vsub.f32 1.0, %v4553_v58  ;;  %vm3699_vm4 = vcmp.gt.f32.partialorder %v3667_v31, 0.3  ;;  %v3670_v46 = vadd.f32 %v6750_v43, %v3631_v19  ;;  %v3630_v35 = vadd.f32 %v3479_v50, %v3240_v62  ;;  %v3489_v18 = vpop.f32.mrf.mxu0 }
 0x1be   : > { %v4552_v49 = vsel %vm3699_vm4, 1.0, %v5355_v20  ;;  %v3243_v56 = vadd.f32 %v5245_v34, %v6693_v17  ;;  %v3099_v7 = vpop.f32.mrf.mxu1  ;;  %v3828_v61 = vmul.f32 0.2, %v3667_v31 }
 0x1bf   : > { %v3893_v26 = vmul.f32 %v3861_v48, %v3829_v11  ;;  %3796 = vst.msk [vmem:[%s6788_s20] sm:$0xff] %vm3795_vm2, %v4552_v49  ;;  %v3860_v22 = vsub.f32 1.0, %v4552_v49  ;;  %vm3702_vm5 = vcmp.gt.f32.partialorder %v3670_v46, 0.3  ;;  %v3669_v41 = vadd.f32 %v6750_v43, %v3630_v35  ;;  %v5298_v63 = vpop.f32.mrf.mxu0 }
 0x1c0   : > { %v4555_v54 = vsel %vm3702_vm5, 1.0, %v5355_v20  ;;  %v3633_v28 = vadd.f32 %v5295_v23, %v3243_v56  ;;  %v3242_v59 = vadd.f32 %v3099_v7, %v6698_v29  ;;  %v5248_v15 = vpop.f32.mrf.mxu1  ;;  %v3831_v44 = vmul.f32 0.2, %v3670_v46 }
 0x1c1   : > { %3925 = vst.msk [vmem:[%s6812_s23 + $0x8] sm:$0xff] %vm3795_vm2, %v3893_v26  ;;  %v3892_v17 = vmul.f32 %v3860_v22, %v3828_v61  ;;  %3799 = vst.msk [vmem:[%s6788_s20 + $0x18] sm:$0xff] %vm3795_vm2, %v4555_v54  ;;  %v3863_v40 = vsub.f32 1.0, %v4555_v54  ;;  %v3245_v0 = vadd.f32 %v5248_v15, %v6701_v51  ;;  %vm3701_vm6 = vcmp.gt.f32.partialorder %v3669_v41, 0.3  ;;  %v3499_v29 = vpop.f32.mrf.mxu0 }
 0x1c2   : > { %v3830_v8 = vmul.f32 0.2, %v3669_v41  ;;  %v3672_v50 = vadd.f32 %v6750_v43, %v3633_v28  ;;  %v3632_v57 = vadd.f32 %v3489_v18, %v3242_v59  ;;  %v3109_v31 = vpop.f32.mrf.mxu1  ;;  %v4554_v2 = vsel %vm3701_vm6, 1.0, %v5355_v20 }
 0x1c3   : > { %3924 = vst.msk [vmem:[%s6812_s23] sm:$0xff] %vm3795_vm2, %v3892_v17  ;;  %v3895_v19 = vmul.f32 %v3863_v40, %v3831_v44  ;;  %v3635_v58 = vadd.f32 %v5298_v63, %v3245_v0  ;;  %v3244_v62 = vadd.f32 %v3109_v31, %v6704_v60  ;;  %3798 = vst.msk [vmem:[%s6788_s20 + $0x10] sm:$0xff] %vm3795_vm2, %v4554_v2  ;;  %v3862_v51 = vsub.f32 1.0, %v4554_v2  ;;  %v5301_v48 = vpop.f32.mrf.mxu0 }
 0x1c4   : > { %vm3704_vm7 = vcmp.gt.f32.partialorder %v3672_v50, 0.3  ;;  %v3833_v34 = vmul.f32 0.2, %v3672_v50  ;;  %v3671_v23 = vadd.f32 %v6750_v43, %v3632_v57  ;;  %v5251_v11 = vpop.f32.mrf.mxu1 }
 0x1c5   : > { %3927 = vst.msk [vmem:[%s6812_s23 + $0x18] sm:$0xff] %vm3795_vm2, %v3895_v19  ;;  %v4557_v46 = vsel %vm3704_vm7, 1.0, %v5355_v20  ;;  %v3674_v30 = vadd.f32 %v6750_v43, %v3635_v58  ;;  %v3634_v49 = vadd.f32 %v3499_v29, %v3244_v62  ;;  %v3247_v60 = vadd.f32 %v5251_v11, %v6712_v42  ;;  %v3509_v26 = vpop.f32.mrf.mxu0  ;;  %v7263_v62 = vld [vmem:[#allocation22_spill] sm:$0xff] }
 0x1c6   : > { %v3894_v35 = vmul.f32 %v3862_v51, %v3830_v8  ;;  %3801 = vst.msk [vmem:[%s6788_s20 + $0x28] sm:$0xff] %vm3795_vm2, %v4557_v46  ;;  %v3865_v56 = vsub.f32 1.0, %v4557_v46  ;;  %vm3703_vm8 = vcmp.gt.f32.partialorder %v3671_v23, 0.3  ;;  %v3832_v7 = vmul.f32 0.2, %v3671_v23  ;;  %v3119_v18 = vpop.f32.mrf.mxu1 }
 0x1c7   : > { %v4556_v61 = vsel %vm3703_vm8, 1.0, %v5355_v20  ;;  %vm3706_vm9 = vcmp.gt.f32.partialorder %v3674_v30, 0.3  ;;  %v3835_v22 = vmul.f32 0.2, %v3674_v30  ;;  %v3673_v54 = vadd.f32 %v6750_v43, %v3634_v49  ;;  %v5304_v63 = vpop.f32.mrf.mxu0 }
 0x1c8   : > { %3926 = vst.msk [vmem:[%s6812_s23 + $0x10] sm:$0xff] %vm3795_vm2, %v3894_v35  ;;  %v3897_v41 = vmul.f32 %v3865_v56, %v3833_v34  ;;  %3800 = vst.msk [vmem:[%s6788_s20 + $0x20] sm:$0xff] %vm3795_vm2, %v4556_v61  ;;  %v3864_v42 = vsub.f32 1.0, %v4556_v61  ;;  %v4559_v28 = vsel %vm3706_vm9, 1.0, %v5355_v20  ;;  %v3637_v59 = vadd.f32 %v5301_v48, %v3247_v60  ;;  %v5254_v15 = vpop.f32.mrf.mxu1  ;;  %v7264_v34 = vld [vmem:[#allocation23_spill] sm:$0xff] }
 0x1c9   : > { %3803 = vst.msk [vmem:[%s6788_s20 + $0x38] sm:$0xff] %vm3795_vm2, %v4559_v28  ;;  %v3867_v17 = vsub.f32 1.0, %v4559_v28  ;;  %vm3705_vm10 = vcmp.gt.f32.partialorder %v3673_v54, 0.3  ;;  %v3834_v44 = vmul.f32 0.2, %v3673_v54  ;;  %v3246_v40 = vadd.f32 %v3119_v18, %v6715_v1  ;;  %v3519_v29 = vpop.f32.mrf.mxu0 }
 0x1ca   : > { %3929 = vst.msk [vmem:[%s6812_s23 + $0x28] sm:$0xff] %vm3795_vm2, %v3897_v41  ;;  %v3896_v0 = vmul.f32 %v3864_v42, %v3832_v7  ;;  %v4558_v8 = vsel %vm3705_vm10, 1.0, %v5355_v20  ;;  %v3676_v50 = vadd.f32 %v6750_v43, %v3637_v59  ;;  %v3249_v57 = vadd.f32 %v5254_v15, %v6718_v24  ;;  %v3129_v31 = vpop.f32.mrf.mxu1 }
 0x1cb   : > { %v3899_v19 = vmul.f32 %v3867_v17, %v3835_v22  ;;  %3802 = vst.msk [vmem:[%s6788_s20 + $0x30] sm:$0xff] %vm3795_vm2, %v4558_v8  ;;  %v3866_v2 = vsub.f32 1.0, %v4558_v8  ;;  %v3636_v58 = vadd.f32 %v3509_v26, %v3246_v40  ;;  %v3248_v1 = vadd.f32 %v3129_v31, %v6722_v9  ;;  %v5307_v48 = vpop.f32.mrf.mxu0 }
 0x1cc   : > { %v2486_v51 = vadd.f32 %v6666_v6, %v7263_v62  ;;  %v2485_v23 = vadd.f32 %v6675_v47, %v7264_v34  ;;  %3928 = vst.msk [vmem:[%s6812_s23 + $0x20] sm:$0xff] %vm3795_vm2, %v3896_v0  ;;  %vm3708_vm11 = vcmp.gt.f32.partialorder %v3676_v50, 0.3  ;;  %v3639_v24 = vadd.f32 %v5304_v63, %v3249_v57  ;;  %v5257_v11 = vpop.f32.mrf.mxu1 }
 0x1cd   : > { %3931 = vst.msk [vmem:[%s6812_s23 + $0x38] sm:$0xff] %vm3795_vm2, %v3899_v19  ;;  %v3898_v46 = vmul.f32 %v3866_v2, %v3834_v44  ;;  %v4561_v30 = vsel %vm3708_vm11, 1.0, %v5355_v20  ;;  %v3675_v9 = vadd.f32 %v6750_v43, %v3636_v58  ;;  %v3638_v49 = vadd.f32 %v3519_v29, %v3248_v1  ;;  %v3529_v7 = vpop.f32.mrf.mxu0 }
 0x1ce   : > { %3805 = vst.msk [vmem:[%s6788_s20 + $0x48] sm:$0xff] %vm3795_vm2, %v4561_v30  ;;  %v3837_v6 = vmul.f32 0.2, %v3676_v50  ;;  %v3869_v60 = vsub.f32 1.0, %v4561_v30  ;;  %v3678_v47 = vadd.f32 %v6750_v43, %v3639_v24  ;;  %v3251_v35 = vadd.f32 %v5257_v11, %v6725_v38  ;;  %v3139_v56 = vpop.f32.mrf.mxu1 }
 0x1cf   : > { %3930 = vst.msk [vmem:[%s6812_s23 + $0x30] sm:$0xff] %vm3795_vm2, %v3898_v46  ;;  %vm3707_vm12 = vcmp.gt.f32.partialorder %v3675_v9, 0.3  ;;  %v3836_v18 = vmul.f32 0.2, %v3675_v9  ;;  %v3677_v26 = vadd.f32 %v6750_v43, %v3638_v49  ;;  %v3250_v61 = vadd.f32 %v3139_v56, %v6731_v36  ;;  %v5310_v38 = vpop.f32.mrf.mxu0 }
 0x1d0   : > { %v3901_v22 = vmul.f32 %v3869_v60, %v3837_v6  ;;  %v4560_v54 = vsel %vm3707_vm12, 1.0, %v5355_v20  ;;  %vm3710_vm13 = vcmp.gt.f32.partialorder %v3678_v47, 0.3  ;;  %v3839_v41 = vmul.f32 0.2, %v3678_v47  ;;  %v5260_v42 = vpop.f32.mrf.mxu1 }
 0x1d1   : > { %3804 = vst.msk [vmem:[%s6788_s20 + $0x40] sm:$0xff] %vm3795_vm2, %v4560_v54  ;;  %v3868_v28 = vsub.f32 1.0, %v4560_v54  ;;  %v4563_v59 = vsel %vm3710_vm13, 1.0, %v5355_v20  ;;  %vm3709_vm14 = vcmp.gt.f32.partialorder %v3677_v26, 0.3  ;;  %v3641_v17 = vadd.f32 %v5307_v48, %v3251_v35  ;;  %v3539_v0 = vpop.f32.mrf.mxu0 }
 0x1d2   : > { %v3838_v15 = vmul.f32 0.2, %v3677_v26  ;;  %3933 = vst.msk [vmem:[%s6812_s23 + $0x48] sm:$0xff] %vm3795_vm2, %v3901_v22  ;;  %3807 = vst.msk [vmem:[%s6788_s20 + $0x58] sm:$0xff] %vm3795_vm2, %v4563_v59  ;;  %v3871_v36 = vsub.f32 1.0, %v4563_v59  ;;  %v4562_v63 = vsel %vm3709_vm14, 1.0, %v5355_v20  ;;  %v3640_v44 = vadd.f32 %v3529_v7, %v3250_v61  ;;  %v3149_v40 = vpop.f32.mrf.mxu1 }
 0x1d3   : > { %v3900_v8 = vmul.f32 %v3868_v28, %v3836_v18  ;;  %3806 = vst.msk [vmem:[%s6788_s20 + $0x50] sm:$0xff] %vm3795_vm2, %v4562_v63  ;;  %v3870_v50 = vsub.f32 1.0, %v4562_v63  ;;  %v3253_v57 = vadd.f32 %v5260_v42, %v6734_v12  ;;  %v3252_v31 = vadd.f32 %v3149_v40, %v6739_v45  ;;  %v5313_v62 = vpop.f32.mrf.mxu0 }
 0x1d4   : > { %v6891_v29 = vadd.f32 %v6668_v52, %v2486_v51  ;;  %v3903_v19 = vmul.f32 %v3871_v36, %v3839_v41  ;;  %v3680_v2 = vadd.f32 %v6750_v43, %v3641_v17  ;;  %v3679_v58 = vadd.f32 %v6750_v43, %v3640_v44  ;;  %v5263_v1 = vpop.f32.mrf.mxu1 }
 0x1d5   : > { %3932 = vst.msk [vmem:[%s6812_s23 + $0x40] sm:$0xff] %vm3795_vm2, %v3900_v8  ;;  %v3902_v34 = vmul.f32 %v3870_v50, %v3838_v15  ;;  %v3643_v24 = vadd.f32 %v5310_v38, %v3253_v57  ;;  %v3642_v11 = vadd.f32 %v3539_v0, %v3252_v31  ;;  %v3255_v12 = vadd.f32 %v5263_v1, %v6753_v37  ;;  %v3549_v48 = vpop.f32.mrf.mxu0  ;;  %v7265_v1 = vld [vmem:[#allocation24_spill] sm:$0xff] }
 0x1d6   : > { %v6899_v52 = vadd.f32 %v6677_v32, %v2485_v23  ;;  %3935 = vst.msk [vmem:[%s6812_s23 + $0x58] sm:$0xff] %vm3795_vm2, %v3903_v19  ;;  %vm3712_vm15 = vcmp.gt.f32.partialorder %v3680_v2, 0.3  ;;  %v3841_v45 = vmul.f32 0.2, %v3680_v2  ;;  %v3159_v51 = vpop.f32.mrf.mxu1 }
 0x1d7   : > { %vm3711_vm0 = vcmp.gt.f32.partialorder %v3679_v58, 0.3  ;;  %3934 = vst.msk [vmem:[%s6812_s23 + $0x50] sm:$0xff] %vm3795_vm2, %v3902_v34  ;;  %v4565_v46 = vsel %vm3712_vm15, 1.0, %v5355_v20  ;;  %v3840_v9 = vmul.f32 0.2, %v3679_v58  ;;  %v3682_v49 = vadd.f32 %v6750_v43, %v3643_v24  ;;  %v5316_v47 = vpop.f32.mrf.mxu0 }
 0x1d8   : > { %v4564_v30 = vsel %vm3711_vm0, 1.0, %v5355_v20  ;;  %3809 = vst.msk [vmem:[%s6788_s20 + $0x68] sm:$0xff] %vm3795_vm2, %v4565_v46  ;;  %v3873_v32 = vsub.f32 1.0, %v4565_v46  ;;  %v3681_v23 = vadd.f32 %v6750_v43, %v3642_v11  ;;  %v3645_v6 = vadd.f32 %v5313_v62, %v3255_v12  ;;  %v5266_v60 = vpop.f32.mrf.mxu1 }
 0x1d9   : > { %3808 = vst.msk [vmem:[%s6788_s20 + $0x60] sm:$0xff] %vm3795_vm2, %v4564_v30  ;;  %v3872_v37 = vsub.f32 1.0, %v4564_v30  ;;  %vm3714_vm1 = vcmp.gt.f32.partialorder %v3682_v49, 0.3  ;;  %v3843_v35 = vmul.f32 0.2, %v3682_v49  ;;  %v3254_v56 = vadd.f32 %v3159_v51, %v6759_v27  ;;  %v3559_v54 = vpop.f32.mrf.mxu0 }
 0x1da   : > { %v3257_v7 = vadd.f32 %v5266_v60, %v6762_v55  ;;  %v3905_v18 = vmul.f32 %v3873_v32, %v3841_v45  ;;  %v4567_v61 = vsel %vm3714_vm1, 1.0, %v5355_v20  ;;  %vm3713_vm3 = vcmp.gt.f32.partialorder %v3681_v23, 0.3  ;;  %v3169_v22 = vpop.f32.mrf.mxu1  ;;  %v7266_v32 = vld [vmem:[#allocation25_spill] sm:$0xff] }
 0x1db   : > { %v3904_v26 = vmul.f32 %v3872_v37, %v3840_v9  ;;  %3811 = vst.msk [vmem:[%s6788_s20 + $0x78] sm:$0xff] %vm3795_vm2, %v4567_v61  ;;  %v3875_v41 = vsub.f32 1.0, %v4567_v61  ;;  %v4566_v42 = vsel %vm3713_vm3, 1.0, %v5355_v20  ;;  %v3842_v38 = vmul.f32 0.2, %v3681_v23  ;;  %v5319_v63 = vpop.f32.mrf.mxu0 }
 0x1dc   : > { %v3684_v28 = vadd.f32 %v6750_v43, %v3645_v6  ;;  %3937 = vst.msk [vmem:[%s6812_s23 + $0x68] sm:$0xff] %vm3795_vm2, %v3905_v18  ;;  %3810 = vst.msk [vmem:[%s6788_s20 + $0x70] sm:$0xff] %vm3795_vm2, %v4566_v42  ;;  %v3874_v27 = vsub.f32 1.0, %v4566_v42  ;;  %v3644_v55 = vadd.f32 %v3549_v48, %v3254_v56  ;;  %v3647_v59 = vadd.f32 %v5316_v47, %v3257_v7  ;;  %v5269_v36 = vpop.f32.mrf.mxu1 }
 0x1dd   : > { %3936 = vst.msk [vmem:[%s6812_s23 + $0x60] sm:$0xff] %vm3795_vm2, %v3904_v26  ;;  %v3256_v15 = vadd.f32 %v3169_v22, %v6769_v33  ;;  %v3907_v17 = vmul.f32 %v3875_v41, %v3843_v35  ;;  %v3259_v40 = vadd.f32 %v5269_v36, %v6773_v13  ;;  %v3569_v19 = vpop.f32.mrf.mxu0  ;;  %v6938_v62 = vadd.f32 %v6687_v10, %v7265_v1 }
 0x1de   : > { %vm3716_vm4 = vcmp.gt.f32.partialorder %v3684_v28, 0.3  ;;  %v3845_v44 = vmul.f32 0.2, %v3684_v28  ;;  %v3906_v0 = vmul.f32 %v3874_v27, %v3842_v38  ;;  %v3683_v50 = vadd.f32 %v6750_v43, %v3644_v55  ;;  %v3179_v31 = vpop.f32.mrf.mxu1 }
 0x1df   : > { %v4569_v8 = vsel %vm3716_vm4, 1.0, %v5355_v20  ;;  %v3686_v57 = vadd.f32 %v6750_v43, %v3647_v59  ;;  %3939 = vst.msk [vmem:[%s6812_s23 + $0x78] sm:$0xff] %vm3795_vm2, %v3907_v17  ;;  %v3646_v2 = vadd.f32 %v3559_v54, %v3256_v15  ;;  %v3649_v58 = vadd.f32 %v5319_v63, %v3259_v40  ;;  %v5322_v11 = vpop.f32.mrf.mxu0 }
 0x1e0   : > { %3813 = vst.msk [vmem:[%s6788_s20 + $0x88] sm:$0xff] %vm3795_vm2, %v4569_v8  ;;  %v3877_v33 = vsub.f32 1.0, %v4569_v8  ;;  %v3258_v13 = vadd.f32 %v3179_v31, %v6776_v25  ;;  %3938 = vst.msk [vmem:[%s6812_s23 + $0x70] sm:$0xff] %vm3795_vm2, %v3906_v0  ;;  %vm3715_vm5 = vcmp.gt.f32.partialorder %v3683_v50, 0.3  ;;  %v5272_v24 = vpop.f32.mrf.mxu1  ;;  %v6952_v37 = vadd.f32 %v6707_v53, %v7266_v32  ;;  %v7267_v8 = vld [vmem:[#allocation12_spill] sm:$0xff] }
 0x1e1   : > { %v3844_v34 = vmul.f32 0.2, %v3683_v50  ;;  %vm3718_vm6 = vcmp.gt.f32.partialorder %v3686_v57, 0.3  ;;  %v4568_v45 = vsel %vm3715_vm5, 1.0, %v5355_v20  ;;  %v3685_v46 = vadd.f32 %v6750_v43, %v3646_v2  ;;  %v3579_v49 = vpop.f32.mrf.mxu0 }
 0x1e2   : > { %v3909_v12 = vmul.f32 %v3877_v33, %v3845_v44  ;;  %v4571_v51 = vsel %vm3718_vm6, 1.0, %v5355_v20  ;;  %v3847_v48 = vmul.f32 0.2, %v3686_v57  ;;  %3812 = vst.msk [vmem:[%s6788_s20 + $0x80] sm:$0xff] %vm3795_vm2, %v4568_v45  ;;  %v3876_v25 = vsub.f32 1.0, %v4568_v45  ;;  %v3189_v9 = vpop.f32.mrf.mxu1 }
 0x1e3   : > { %3815 = vst.msk [vmem:[%s6788_s20 + $0x98] sm:$0xff] %vm3795_vm2, %v4571_v51  ;;  %v3879_v10 = vsub.f32 1.0, %v4571_v51  ;;  %v3688_v30 = vadd.f32 %v6750_v43, %v3649_v58  ;;  %v3648_v23 = vadd.f32 %v3569_v19, %v3258_v13  ;;  %v3261_v6 = vadd.f32 %v5272_v24, %v6779_v16  ;;  %v5325_v18 = vpop.f32.mrf.mxu0 }
 0x1e4   : > { %3941 = vst.msk [vmem:[%s6812_s23 + $0x88] sm:$0xff] %vm3795_vm2, %v3909_v12  ;;  %v3260_v60 = vadd.f32 %v3189_v9, %v6791_v4  ;;  %v3908_v47 = vmul.f32 %v3876_v25, %v3844_v34  ;;  %vm3717_vm7 = vcmp.gt.f32.partialorder %v3685_v46, 0.3  ;;  %v3846_v56 = vmul.f32 0.2, %v3685_v46  ;;  %v5275_v7 = vpop.f32.mrf.mxu1 }
 0x1e5   : > { %v3911_v35 = vmul.f32 %v3879_v10, %v3847_v48  ;;  %v4570_v26 = vsel %vm3717_vm7, 1.0, %v5355_v20  ;;  %vm3720_vm8 = vcmp.gt.f32.partialorder %v3688_v30, 0.3  ;;  %v3849_v53 = vmul.f32 0.2, %v3688_v30  ;;  %v3589_v42 = vpop.f32.mrf.mxu0 }
 0x1e6   : > { %v3687_v61 = vadd.f32 %v6750_v43, %v3648_v23  ;;  %3940 = vst.msk [vmem:[%s6812_s23 + $0x80] sm:$0xff] %vm3795_vm2, %v3908_v47  ;;  %3814 = vst.msk [vmem:[%s6788_s20 + $0x90] sm:$0xff] %vm3795_vm2, %v4570_v26  ;;  %v3878_v16 = vsub.f32 1.0, %v4570_v26  ;;  %v4573_v4 = vsel %vm3720_vm8, 1.0, %v5355_v20  ;;  %v3651_v22 = vadd.f32 %v5322_v11, %v3261_v6  ;;  %v3199_v41 = vpop.f32.mrf.mxu1 }
 0x1e7   : > { %3943 = vst.msk [vmem:[%s6812_s23 + $0x98] sm:$0xff] %vm3795_vm2, %v3911_v35  ;;  %v3650_v54 = vadd.f32 %v3579_v49, %v3260_v60  ;;  %3817 = vst.msk [vmem:[%s6788_s20 + $0xa8] sm:$0xff] %vm3795_vm2, %v4573_v4  ;;  %v3881_v38 = vsub.f32 1.0, %v4573_v4  ;;  %v3263_v27 = vadd.f32 %v5275_v7, %v6795_v5  ;;  %v5328_v17 = vpop.f32.mrf.mxu0  ;;  %v3262_v50 = vadd.f32 %v3199_v41, %v7267_v8 }
 0x1e8   : > { %vm3719_vm9 = vcmp.gt.f32.partialorder %v3687_v61, 0.3  ;;  %v3848_v28 = vmul.f32 0.2, %v3687_v61  ;;  %v3910_v55 = vmul.f32 %v3878_v16, %v3846_v56  ;;  %v3690_v15 = vadd.f32 %v6750_v43, %v3651_v22  ;;  %v5278_v63 = vpop.f32.mrf.mxu1 }
 0x1e9   : > { %v4572_v59 = vsel %vm3719_vm9, 1.0, %v5355_v20  ;;  %v3689_v36 = vadd.f32 %v6750_v43, %v3650_v54  ;;  %v3913_v44 = vmul.f32 %v3881_v38, %v3849_v53  ;;  %v3653_v0 = vadd.f32 %v5325_v18, %v3263_v27  ;;  %v3599_v19 = vpop.f32.mrf.mxu0 }
 0x1ea   : > { %3816 = vst.msk [vmem:[%s6788_s20 + $0xa0] sm:$0xff] %vm3795_vm2, %v4572_v59  ;;  %v3880_v40 = vsub.f32 1.0, %v4572_v59  ;;  %3942 = vst.msk [vmem:[%s6812_s23 + $0x90] sm:$0xff] %vm3795_vm2, %v3910_v55  ;;  %vm3722_vm10 = vcmp.gt.f32.partialorder %v3690_v15, 0.3  ;;  %v3265_v57 = vadd.f32 %v5278_v63, %v6798_v21  ;;  %v3209_v31 = vpop.f32.mrf.mxu1  ;;  %v3652_v21 = vadd.f32 %v3589_v42, %v3262_v50 }
 0x1eb   : > { %v3851_v5 = vmul.f32 0.2, %v3690_v15  ;;  %vm3721_vm11 = vcmp.gt.f32.partialorder %v3689_v36, 0.3  ;;  %3945 = vst.msk [vmem:[%s6812_s23 + $0xa8] sm:$0xff] %vm3795_vm2, %v3913_v44  ;;  %v4575_v2 = vsel %vm3722_vm10, 1.0, %v5355_v20  ;;  %v3692_v24 = vadd.f32 %v6750_v43, %v3653_v0  ;;  %v5331_v12 = vpop.f32.mrf.mxu0 }
 0x1ec   : > { %v3912_v33 = vmul.f32 %v3880_v40, %v3848_v28  ;;  %v4574_v58 = vsel %vm3721_vm11, 1.0, %v5355_v20  ;;  %v3850_v13 = vmul.f32 0.2, %v3689_v36  ;;  %3819 = vst.msk [vmem:[%s6788_s20 + $0xb8] sm:$0xff] %vm3795_vm2, %v4575_v2  ;;  %v3883_v1 = vsub.f32 1.0, %v4575_v2  ;;  %v5281_v11 = vpop.f32.mrf.mxu1 }
 0x1ed   : > { %3818 = vst.msk [vmem:[%s6788_s20 + $0xb0] sm:$0xff] %vm3795_vm2, %v4574_v58  ;;  %v3882_v34 = vsub.f32 1.0, %v4574_v58  ;;  %v2879_v45 = vadd.f32 %v6689_v3, %v6938_v62  ;;  %v3655_v51 = vadd.f32 %v5328_v17, %v3265_v57  ;;  %v3264_v48 = vadd.f32 %v3209_v31, %v6805_v14  ;;  %v3609_v49 = vpop.f32.mrf.mxu0 }
 0x1ee   : > { %3944 = vst.msk [vmem:[%s6812_s23 + $0xa0] sm:$0xff] %vm3795_vm2, %v3912_v33  ;;  %v3267_v25 = vadd.f32 %v5281_v11, %v6891_v29  ;;  %v2878_v10 = vadd.f32 %v6709_v39, %v6952_v37  ;;  %v3915_v46 = vmul.f32 %v3883_v1, %v3851_v5  ;;  %vm3724_vm12 = vcmp.gt.f32.partialorder %v3692_v24, 0.3  ;;  %v3219_v9 = vpop.f32.mrf.mxu1 }
 0x1ef   : > { %v3914_v30 = vmul.f32 %v3882_v34, %v3850_v13  ;;  %v4577_v32 = vsel %vm3724_vm12, 1.0, %v5355_v20  ;;  %v3691_v3 = vadd.f32 %v6750_v43, %v3652_v21  ;;  %v3694_v62 = vadd.f32 %v6750_v43, %v3655_v51  ;;  %v5334_v26 = vpop.f32.mrf.mxu0 }
 0x1f0   : > { %v3654_v23 = vadd.f32 %v3599_v19, %v3264_v48  ;;  %3947 = vst.msk [vmem:[%s6812_s23 + $0xb8] sm:$0xff] %vm3795_vm2, %v3915_v46  ;;  %3821 = vst.msk [vmem:[%s6788_s20 + $0xc8] sm:$0xff] %vm3795_vm2, %v4577_v32  ;;  %v3853_v39 = vmul.f32 0.2, %v3692_v24  ;;  %v3885_v14 = vsub.f32 1.0, %v4577_v32  ;;  %v3657_v29 = vadd.f32 %v5331_v12, %v3267_v25  ;;  %v5284_v6 = vpop.f32.mrf.mxu1 }
 0x1f1   : > { %3946 = vst.msk [vmem:[%s6812_s23 + $0xb0] sm:$0xff] %vm3795_vm2, %v3914_v30  ;;  %v3266_v37 = vadd.f32 %v3219_v9, %v6899_v52  ;;  %vm3723_vm13 = vcmp.gt.f32.partialorder %v3691_v3, 0.3  ;;  %v3852_v60 = vmul.f32 0.2, %v3691_v3  ;;  %v3269_v41 = vadd.f32 %v5284_v6, %v2879_v45  ;;  %v3619_v15 = vpop.f32.mrf.mxu0 }
 0x1f2   : > { %vm3726_vm14 = vcmp.gt.f32.partialorder %v3694_v62, 0.3  ;;  %v3693_v47 = vadd.f32 %v6750_v43, %v3654_v23  ;;  %v3917_v35 = vmul.f32 %v3885_v14, %v3853_v39  ;;  %v4576_v56 = vsel %vm3723_vm13, 1.0, %v5355_v20  ;;  %v3229_v53 = vpop.f32.mrf.mxu1 }
 0x1f3   : > { %v4579_v7 = vsel %vm3726_vm14, 1.0, %v5355_v20  ;;  %v3855_v18 = vmul.f32 0.2, %v3694_v62  ;;  %3820 = vst.msk [vmem:[%s6788_s20 + $0xc0] sm:$0xff] %vm3795_vm2, %v4576_v56  ;;  %v3884_v61 = vsub.f32 1.0, %v4576_v56  ;;  %v3696_v22 = vadd.f32 %v6750_v43, %v3657_v29 }
 0x1f4   : > { %3823 = vst.msk [vmem:[%s6788_s20 + $0xd8] sm:$0xff] %vm3795_vm2, %v4579_v7  ;;  %v3887_v52 = vsub.f32 1.0, %v4579_v7  ;;  %vm3725_vm15 = vcmp.gt.f32.partialorder %v3693_v47, 0.3  ;;  %v3854_v16 = vmul.f32 0.2, %v3693_v47  ;;  %v3656_v54 = vadd.f32 %v3609_v49, %v3266_v37 }
 0x1f5   : > { %3949 = vst.msk [vmem:[%s6812_s23 + $0xc8] sm:$0xff] %vm3795_vm2, %v3917_v35  ;;  %v4578_v4 = vsel %vm3725_vm15, 1.0, %v5355_v20  ;;  %v3916_v42 = vmul.f32 %v3884_v61, %v3852_v60  ;;  %v3268_v27 = vadd.f32 %v3229_v53, %v2878_v10  ;;  %vm3728_vm0 = vcmp.gt.f32.partialorder %v3696_v22, 0.3 }
 0x1f6   : > { %v3919_v38 = vmul.f32 %v3887_v52, %v3855_v18  ;;  %3822 = vst.msk [vmem:[%s6788_s20 + $0xd0] sm:$0xff] %vm3795_vm2, %v4578_v4  ;;  %v3886_v28 = vsub.f32 1.0, %v4578_v4  ;;  %v3695_v55 = vadd.f32 %v6750_v43, %v3656_v54  ;;  %v3659_v59 = vadd.f32 %v5334_v26, %v3269_v41 }
 0x1f7   : > { %3948 = vst.msk [vmem:[%s6812_s23 + $0xc0] sm:$0xff] %vm3795_vm2, %v3916_v42  ;;  %v4581_v63 = vsel %vm3728_vm0, 1.0, %v5355_v20  ;;  %v3658_v17 = vadd.f32 %v3619_v15, %v3268_v27  ;;  %v3857_v44 = vmul.f32 0.2, %v3696_v22 }
 0x1f8   : > { %3951 = vst.msk [vmem:[%s6812_s23 + $0xd8] sm:$0xff] %vm3795_vm2, %v3919_v38  ;;  %v3918_v36 = vmul.f32 %v3886_v28, %v3854_v16  ;;  %3825 = vst.msk [vmem:[%s6788_s20 + $0xe8] sm:$0xff] %vm3795_vm2, %v4581_v63  ;;  %v3889_v40 = vsub.f32 1.0, %v4581_v63  ;;  %vm3727_vm1 = vcmp.gt.f32.partialorder %v3695_v55, 0.3  ;;  %v3698_v0 = vadd.f32 %v6750_v43, %v3659_v59 }
 0x1f9   : > { %v4580_v8 = vsel %vm3727_vm1, 1.0, %v5355_v20  ;;  %v3697_v50 = vadd.f32 %v6750_v43, %v3658_v17  ;;  %v3856_v57 = vmul.f32 0.2, %v3695_v55 }
 0x1fa   : > { %3950 = vst.msk [vmem:[%s6812_s23 + $0xd0] sm:$0xff] %vm3795_vm2, %v3918_v36  ;;  %v3921_v5 = vmul.f32 %v3889_v40, %v3857_v44  ;;  %3824 = vst.msk [vmem:[%s6788_s20 + $0xe0] sm:$0xff] %vm3795_vm2, %v4580_v8  ;;  %v3888_v31 = vsub.f32 1.0, %v4580_v8  ;;  %vm3730_vm3 = vcmp.gt.f32.partialorder %v3698_v0, 0.3 }
 0x1fb   : > { %v4583_v19 = vsel %vm3730_vm3, 1.0, %v5355_v20  ;;  %vm3729_vm4 = vcmp.gt.f32.partialorder %v3697_v50, 0.3  ;;  %v3859_v2 = vmul.f32 0.2, %v3698_v0 }
 0x1fc   : > { %3953 = vst.msk [vmem:[%s6812_s23 + $0xe8] sm:$0xff] %vm3795_vm2, %v3921_v5  ;;  %v3920_v33 = vmul.f32 %v3888_v31, %v3856_v57  ;;  %3827 = vst.msk [vmem:[%s6788_s20 + $0xf8] sm:$0xff] %vm3795_vm2, %v4583_v19  ;;  %v3891_v58 = vsub.f32 1.0, %v4583_v19  ;;  %v4582_v43 = vsel %vm3729_vm4, 1.0, %v5355_v20  ;;  %v3858_v13 = vmul.f32 0.2, %v3697_v50 }
 0x1fd   : > { %3826 = vst.msk [vmem:[%s6788_s20 + $0xf0] sm:$0xff] %vm3795_vm2, %v4582_v43  ;;  %v3890_v1 = vsub.f32 1.0, %v4582_v43 }
 0x1fe   : > { %3952 = vst.msk [vmem:[%s6812_s23 + $0xe0] sm:$0xff] %vm3795_vm2, %v3920_v33  ;;  %v3923_v34 = vmul.f32 %v3891_v58, %v3859_v2 }
 0x1ff   : > { %v3922_v24 = vmul.f32 %v3890_v1, %v3858_v13 }
 0x200   : > { %3955 = vst.msk [vmem:[%s6812_s23 + $0xf8] sm:$0xff] %vm3795_vm2, %v3923_v34 }
 0x201   : > { %3954 = vst.msk [vmem:[%s6812_s23 + $0xf0] sm:$0xff] %vm3795_vm2, %v3922_v24 }
 0x202 PF: > { %s15_s15 = sadd.s32 1, %s5353_s15  }
 0x203   : > { %p12_p4 = scmp.ge.s32.totalorder %s15_s15, 4  }
 0x205   :  { %14 = sbr.rel (!%p12_p4) target bundleno = 1 (0x1), region = 84 }

</bundles_post_ra>
